<compile_context>
chip_gen: v5e
topology: v5e:2x2
jax: 0.10.0
libtpu: 0.0.40
codegen_flags: <defaults>
</compile_context>

<pallas_src>
import functools
import math

import jax
import jax.numpy as jnp
from jax import lax
from jax.experimental import pallas as pl
from jax.experimental.pallas import tpu as pltpu


def _layer_norm(h, w, b, eps=1e-5):
    # f32 elementwise path (v5e VPU/EUP have no bf16 path anyway).
    mean = jnp.mean(h, axis=-1, keepdims=True)
    var = jnp.mean((h - mean) ** 2, axis=-1, keepdims=True)
    return (h - mean) * lax.rsqrt(var + eps) * w + b


def _largest_divisor_leq(n, cap):
    if n <= cap:
        return n
    for d in range(cap, 0, -1):
        if n % d == 0:
            return d
    return n


def _physical_vmem_bytes():
    try:
        info = pltpu.get_tpu_info()
        cap = getattr(info, "vmem_capacity_bytes", None)
        if cap:
            return int(cap)
    except Exception:
        pass
    return 64 * 1024 * 1024   # conservative fallback (v7x per-TC VMEM)


def encoder_stack_kernel(
    x_ref, wqkv_ref, wo_ref, w1_ref, w2_ref, b1_ref, vec_ref,
    out_ref,
    h1_scr, acc_scr,
    *, num_heads, embed_size, seq_len, batch_tile, kv_tile, ffn_tiles,
):
    layer = pl.program_id(1)            # "arbitrary": layers
    nf = pl.program_id(2)               # "arbitrary": FFN hidden tiles
    E = embed_size
    H = num_heads
    D = E // H
    S = seq_len
    TB = batch_tile
    T = TB * S
    n_kv = S // kv_tile

    # Layer 0 seeds the VMEM-resident activation carry; out block index is
    # constant along (layer, ffn_tile) so out_ref stays resident for the whole
    # stack and is written back to HBM once per batch block.
    @pl.when((layer == 0) & (nf == 0))
    def _seed():
        out_ref[...] = x_ref[...]

    vecs = vec_ref[0]                   # (8, E) f32 packed per-layer vectors
    bo = vecs[0:1, :]
    ln1w = vecs[1:2, :]
    ln1b = vecs[2:3, :]
    ln2w = vecs[3:4, :]
    ln2b = vecs[4:5, :]
    b2 = vecs[5:6, :]

    # ---- attention + LayerNorm1 : only at the first FFN tile of each layer --
    @pl.when(nf == 0)
    def _attention_and_ln1():
        h = out_ref[...].reshape(T, E)           # (T, E) f32 activation carry
        hb = h.astype(jnp.bfloat16)

        # fused Q/K/V projection: one MXU op, lane-dense (3E) output
        qkv = jnp.dot(hb, wqkv_ref[0], preferred_element_type=jnp.float32)
        # fold the 1/sqrt(embed_size) score scale into q once
        q_all = qkv[:, :E] * (1.0 / math.sqrt(E))

        wo = wo_ref[0]                           # (H, D, E) bf16
        attn = jnp.zeros((T, E), jnp.float32)

        for hh in range(H):                      # static per-head loop
            qh = q_all[:, hh * D:(hh + 1) * D].reshape(TB, S, D).astype(jnp.bfloat16)
            kh = qkv[:, E + hh * D: E + (hh + 1) * D].reshape(TB, S, D).astype(jnp.bfloat16)
            vh = qkv[:, 2 * E + hh * D: 2 * E + (hh + 1) * D].reshape(TB, S, D).astype(jnp.bfloat16)

            # flash-style online softmax over KV chunks (exact softmax; a
            # single chunk when S is small) — never materializes (S, S) f32
            # for the whole sequence.
            m = l = acc = None
            for j in range(n_kv):
                kj = kh[:, j * kv_tile:(j + 1) * kv_tile, :]
                vj = vh[:, j * kv_tile:(j + 1) * kv_tile, :]
                s = jnp.einsum("bqd,bkd->bqk", qh, kj,
                               preferred_element_type=jnp.float32)  # (TB,S,TKV)
                if j == 0:
                    m = jnp.max(s, axis=-1, keepdims=True)
                    p = jnp.exp(s - m)
                    l = jnp.sum(p, axis=-1, keepdims=True)
                    acc = jnp.einsum("bqk,bkd->bqd", p.astype(jnp.bfloat16), vj,
                                     preferred_element_type=jnp.float32)
                else:
                    m_new = jnp.maximum(m, jnp.max(s, axis=-1, keepdims=True))
                    alpha = jnp.exp(m - m_new)
                    p = jnp.exp(s - m_new)
                    l = alpha * l + jnp.sum(p, axis=-1, keepdims=True)
                    acc = alpha * acc + jnp.einsum(
                        "bqk,bkd->bqd", p.astype(jnp.bfloat16), vj,
                        preferred_element_type=jnp.float32)
                    m = m_new

            # approx reciprocal uses the EUP slot; small relative error vs
            # exact division (acceptable vs bf16 matmul noise).
            o_h = (acc * pl.reciprocal(l, approx=True)).reshape(T, D)
            # head merge folded into the output projection (no transpose/concat)
            attn = attn + jnp.dot(o_h.astype(jnp.bfloat16), wo[hh],
                                  preferred_element_type=jnp.float32)

        # residual + LayerNorm 1 (dropout = identity in eval mode)
        h1 = _layer_norm(attn + bo + h, ln1w, ln1b)
        h1_scr[...] = h1
        acc_scr[...] = jnp.zeros_like(acc_scr)

    # ---- FFN hidden tile nf: h1 @ w1[:, tile] -> ReLU -> @ w2[tile, :] ------
    h1b = h1_scr[...].astype(jnp.bfloat16)
    f = jnp.dot(h1b, w1_ref[0], preferred_element_type=jnp.float32) + b1_ref[0]
    f = jnp.maximum(f, 0.0)
    acc_scr[...] += jnp.dot(f.astype(jnp.bfloat16), w2_ref[0],
                            preferred_element_type=jnp.float32)

    # ---- finalize layer: residual + LayerNorm 2 ------------------------------
    @pl.when(nf == ffn_tiles - 1)
    def _finalize():
        h1 = h1_scr[...]
        out = _layer_norm(acc_scr[...] + b2 + h1, ln2w, ln2b)
        out_ref[...] = out.reshape(TB, S, E).astype(out_ref.dtype)


def encoder_stack(x, stacked, num_heads, *, batch_tile=None, kv_tile=None,
                  ffn_tile=None):
    """Run the full transformer stack (all layers) in a single pallas_call."""
    B, S, E = x.shape
    L = stacked["wqkv"].shape[0]
    hidden = stacked["w1"].shape[-1]
    H = num_heads
    D = E // H
    assert E % H == 0

    # Batch folding: keep 2 parallel blocks when possible so both v7x
    # TensorCores get work; on v5e/v6e (1 TC) this is harmless.
    if batch_tile is None:
        batch_tile = B // 2 if (B % 2 == 0 and B > 1) else B
    assert B % batch_tile == 0
    TB = batch_tile
    GB = B // TB
    T = TB * S

    if kv_tile is None:
        kv_tile = _largest_divisor_leq(S, 512)
    assert S % kv_tile == 0

    if ffn_tile is None:
        ffn_tile = _largest_divisor_leq(hidden, 2048)
    assert hidden % ffn_tile == 0
    assert ffn_tile == hidden or ffn_tile % 128 == 0
    NF = hidden // ffn_tile

    # --- generation-aware VMEM budget (includes intermediates) ---------------
    def nbytes(shape, dtype):
        return math.prod(shape) * jnp.dtype(dtype).itemsize

    need = 0
    # double-buffered pipeline blocks
    need += 2 * 2 * nbytes((TB, S, E), jnp.float32)               # x + out
    need += 2 * nbytes((E, 3 * E), jnp.bfloat16)                  # wqkv
    need += 2 * nbytes((E, E), jnp.bfloat16)                      # wo
    need += 2 * 2 * nbytes((E, ffn_tile), jnp.bfloat16)           # w1 + w2
    need += 2 * (nbytes((1, ffn_tile), jnp.float32) + nbytes((8, E), jnp.float32))
    # persistent scratch
    need += 2 * nbytes((T, E), jnp.float32)
    # live intermediates
    need += nbytes((T, 3 * E), jnp.float32) + nbytes((T, 3 * E), jnp.bfloat16)
    need += 2 * nbytes((TB, S, kv_tile), jnp.float32)             # scores / p
    need += 2 * nbytes((TB, S, D), jnp.float32)                   # per-head acc
    need += nbytes((T, ffn_tile), jnp.float32) + nbytes((T, ffn_tile), jnp.bfloat16)
    need += 4 * nbytes((T, E), jnp.float32)                       # attn/h1/out temps
    phys = _physical_vmem_bytes()
    vmem_limit = int(min(max(int(1.5 * need), 32 * 1024 * 1024),
                         int(0.9 * phys)))

    grid = (GB, L, NF)
    in_specs = [
        pl.BlockSpec((TB, S, E), lambda b, l, n: (b, 0, 0)),          # x
        pl.BlockSpec((1, E, 3 * E), lambda b, l, n: (l, 0, 0)),       # wqkv
        pl.BlockSpec((1, H, D, E), lambda b, l, n: (l, 0, 0, 0)),     # wo (H,D,E)
        pl.BlockSpec((1, E, ffn_tile), lambda b, l, n: (l, 0, n)),    # w1 tile
        pl.BlockSpec((1, ffn_tile, E), lambda b, l, n: (l, n, 0)),    # w2 tile
        pl.BlockSpec((1, 1, ffn_tile), lambda b, l, n: (l, 0, n)),    # b1 tile
        pl.BlockSpec((1, 8, E), lambda b, l, n: (l, 0, 0)),           # packed vecs
    ]
    out_spec = pl.BlockSpec((TB, S, E), lambda b, l, n: (b, 0, 0))

    kernel = functools.partial(
        encoder_stack_kernel,
        num_heads=H, embed_size=E, seq_len=S, batch_tile=TB,
        kv_tile=kv_tile, ffn_tiles=NF)

    return pl.pallas_call(
        kernel,
        out_shape=jax.ShapeDtypeStruct((B, S, E), x.dtype),
        grid_spec=pltpu.PrefetchScalarGridSpec(
            num_scalar_prefetch=0,
            grid=grid,
            in_specs=in_specs,
            out_specs=out_spec,
            scratch_shapes=[pltpu.VMEM((T, E), jnp.float32),   # h1 carry
                            pltpu.VMEM((T, E), jnp.float32)],  # FFN accumulator
        ),
        compiler_params=pltpu.CompilerParams(
            dimension_semantics=("parallel", "arbitrary", "arbitrary"),
            vmem_limit_bytes=vmem_limit),
    )(x, stacked["wqkv"], stacked["wo"], stacked["w1"], stacked["w2"],
      stacked["b1"], stacked["vecs"])


def init_encoder_params(key, vocab_size, embed_size, num_layers, num_heads,
                        forward_expansion, max_length):
    head_dim = embed_size // num_heads
    hidden = forward_expansion * embed_size
    keys = jax.random.split(key, 2 + num_layers)
    params = {
        "word_embedding": 0.02 * jax.random.normal(
            keys[0], (vocab_size, embed_size), jnp.float32),
        "position_embedding": 0.02 * jax.random.normal(
            keys[1], (max_length, embed_size), jnp.float32),
    }

    wqkv_l, wo_l, w1_l, w2_l, b1_l, vec_l = [], [], [], [], [], []
    eye_h = jnp.eye(num_heads, dtype=jnp.float32)
    for li in range(num_layers):
        lk = jax.random.split(keys[2 + li], 6)
        # per-head shared (head_dim, head_dim) projections, expanded to
        # block-diagonal (E, E) matrices (kron with identity). Dense form is
        # kept on purpose: for D < 128 per-head matmuls would underfill the MXU.
        wq_h = 0.1 * jax.random.normal(lk[0], (head_dim, head_dim), jnp.float32)
        wk_h = 0.1 * jax.random.normal(lk[1], (head_dim, head_dim), jnp.float32)
        wv_h = 0.1 * jax.random.normal(lk[2], (head_dim, head_dim), jnp.float32)
        wq = jnp.kron(eye_h, wq_h)
        wk = jnp.kron(eye_h, wk_h)
        wv = jnp.kron(eye_h, wv_h)
        wo = 0.1 * jax.random.normal(lk[3], (embed_size, embed_size), jnp.float32)
        w1 = 0.1 * jax.random.normal(lk[4], (embed_size, hidden), jnp.float32)
        w2 = 0.1 * jax.random.normal(lk[5], (hidden, embed_size), jnp.float32)

        wqkv_l.append(jnp.concatenate([wq, wk, wv], axis=1))     # (E, 3E)
        wo_l.append(wo.reshape(num_heads, head_dim, embed_size))  # (H, D, E)
        w1_l.append(w1)
        w2_l.append(w2)
        b1_l.append(jnp.zeros((1, hidden), jnp.float32))
        # packed per-layer vectors: rows = [bo, ln1w, ln1b, ln2w, ln2b, b2, 0, 0]
        vec = jnp.zeros((8, embed_size), jnp.float32)
        vec = vec.at[1].set(1.0).at[3].set(1.0)                  # ln1w, ln2w = 1
        vec_l.append(vec)

    params["layers"] = {
        "wqkv": jnp.stack(wqkv_l).astype(jnp.bfloat16),   # (L, E, 3E)
        "wo":   jnp.stack(wo_l).astype(jnp.bfloat16),     # (L, H, D, E)
        "w1":   jnp.stack(w1_l).astype(jnp.bfloat16),     # (L, E, F*E)
        "w2":   jnp.stack(w2_l).astype(jnp.bfloat16),     # (L, F*E, E)
        "b1":   jnp.stack(b1_l).astype(jnp.float32),      # (L, 1, F*E)
        "vecs": jnp.stack(vec_l).astype(jnp.float32),     # (L, 8, E)
    }
    return params


@functools.partial(jax.jit,
                   static_argnames=("num_heads", "batch_tile", "kv_tile",
                                    "ffn_tile"))
def encoder_forward(tokens, params, num_heads, batch_tile=None, kv_tile=None,
                    ffn_tile=None):
    """Equivalent of Encoder.forward (inference / eval mode)."""
    B, S = tokens.shape
    # Embedding gathers are glue (plain JAX); the transformer hot path is Pallas.
    word = jnp.take(params["word_embedding"], tokens, axis=0)      # (B, S, E)
    pos = params["position_embedding"][:S]                         # (S, E)
    out = word + pos[None, :, :]   # dropout = identity in eval mode
    return encoder_stack(out, params["layers"], num_heads,
                         batch_tile=batch_tile, kv_tile=kv_tile,
                         ffn_tile=ffn_tile)
    # TODO(synk): training mode would need a dropout PRNG path
    # (pltpu.prng_seed / prng_random_bits); inference only here.


if __name__ == "__main__":
    # Small, self-consistent shapes; embed_size is a multiple of 128 so every
    # output / weight block is lane-dense. ffn_tile=256 exercises the tiled
    # (2-step) FFN accumulation path; kv chunking collapses to 1 chunk at S=8.
    vocab_size = 50
    embed_size = 128
    num_layers = 2
    num_heads = 4
    forward_expansion = 4
    max_length = 16
    batch_size, seq_length = 2, 8

    key = jax.random.PRNGKey(0)
    k_tok, k_par = jax.random.split(key)
    tokens = jax.random.randint(k_tok, (batch_size, seq_length), 0, vocab_size,
                                dtype=jnp.int32)
    params = init_encoder_params(k_par, vocab_size, embed_size, num_layers,
                                 num_heads, forward_expansion, max_length)

    out = encoder_forward(tokens, params, num_heads, ffn_tile=256)
    jax.block_until_ready(out)
    assert out.shape == (batch_size, seq_length, embed_size)
    assert bool(jnp.all(jnp.isfinite(out)))
    print("KERNEL_OK")
</pallas_src>

<mosaic_0001>
module attributes {stable_mosaic.version = 11 : i64} {
  func.func @encoder_stack_kernel(%arg0: i32, %arg1: i32, %arg2: i32, %arg3: memref<1x8x128xf32, #tpu.memory_space<vmem>>, %arg4: memref<1x128x384xbf16, #tpu.memory_space<vmem>>, %arg5: memref<1x4x32x128xbf16, #tpu.memory_space<vmem>>, %arg6: memref<1x128x256xbf16, #tpu.memory_space<vmem>>, %arg7: memref<1x256x128xbf16, #tpu.memory_space<vmem>>, %arg8: memref<1x1x256xf32, #tpu.memory_space<vmem>>, %arg9: memref<1x8x128xf32, #tpu.memory_space<vmem>>, %arg10: memref<1x8x128xf32, #tpu.memory_space<vmem>>, %arg11: memref<8x128xf32, #tpu.memory_space<vmem>>, %arg12: memref<8x128xf32, #tpu.memory_space<vmem>>) attributes {dimension_semantics = [#tpu.dimension_semantics<parallel>, #tpu.dimension_semantics<arbitrary>, #tpu.dimension_semantics<arbitrary>], iteration_bounds = array<i64: 2, 2, 2>, scalar_prefetch = 0 : i64, scratch_operands = 2 : i64, tpu.core_type = #tpu.core_type<tc>, window_params = [{transform_indices = @transform_0, window_bounds = array<i64: 1, 8, 128>}, {transform_indices = @transform_1, window_bounds = array<i64: 1, 128, 384>}, {transform_indices = @transform_2, window_bounds = array<i64: 1, 4, 32, 128>}, {transform_indices = @transform_3, window_bounds = array<i64: 1, 128, 256>}, {transform_indices = @transform_4, window_bounds = array<i64: 1, 256, 128>}, {transform_indices = @transform_5, window_bounds = array<i64: 1, 1, 256>}, {transform_indices = @transform_6, window_bounds = array<i64: 1, 8, 128>}, {transform_indices = @transform_7, window_bounds = array<i64: 1, 8, 128>}]} {
    %c0_i32 = arith.constant 0 : i32
    %0 = arith.cmpi eq, %arg1, %c0_i32 : i32
    %c0_i32_0 = arith.constant 0 : i32
    %1 = arith.cmpi eq, %arg2, %c0_i32_0 : i32
    %2 = arith.andi %0, %1 : i1
    %3 = arith.extui %2 : i1 to i32
    %c0_i32_1 = arith.constant 0 : i32
    %4 = arith.cmpi ne, %3, %c0_i32_1 : i32
    scf.if %4 {
      %c0_24 = arith.constant 0 : index
      %c0_25 = arith.constant 0 : index
      %c0_26 = arith.constant 0 : index
      %37 = vector.load %arg3[%c0_24, %c0_25, %c0_26] : memref<1x8x128xf32, #tpu.memory_space<vmem>>, vector<1x8x128xf32>
      %c0_27 = arith.constant 0 : index
      %c0_28 = arith.constant 0 : index
      %c0_29 = arith.constant 0 : index
      %38 = vector.load %arg10[%c0_27, %c0_28, %c0_29] : memref<1x8x128xf32, #tpu.memory_space<vmem>>, vector<1x8x128xf32>
      tpu.vector_store %arg10[%c0_27, %c0_28, %c0_29], %37 {strides = array<i32>} : memref<1x8x128xf32, #tpu.memory_space<vmem>>, vector<1x8x128xf32>,
    } else {
    }
    %c0 = arith.constant 0 : index
    %c0_2 = arith.constant 0 : index
    %c0_3 = arith.constant 0 : index
    %5 = vector.load %arg9[%c0, %c0_2, %c0_3] : memref<1x8x128xf32, #tpu.memory_space<vmem>>, vector<1x8x128xf32>
    %6 = vector.shape_cast %5 : vector<1x8x128xf32> to vector<8x128xf32>
    %7 = vector.extract_strided_slice %6 {offsets = [0, 0], sizes = [1, 128], strides = [1, 1]} : vector<8x128xf32> to vector<1x128xf32>
    %8 = vector.extract_strided_slice %6 {offsets = [1, 0], sizes = [1, 128], strides = [1, 1]} : vector<8x128xf32> to vector<1x128xf32>
    %9 = vector.extract_strided_slice %6 {offsets = [2, 0], sizes = [1, 128], strides = [1, 1]} : vector<8x128xf32> to vector<1x128xf32>
    %10 = vector.extract_strided_slice %6 {offsets = [3, 0], sizes = [1, 128], strides = [1, 1]} : vector<8x128xf32> to vector<1x128xf32>
    %11 = vector.extract_strided_slice %6 {offsets = [4, 0], sizes = [1, 128], strides = [1, 1]} : vector<8x128xf32> to vector<1x128xf32>
    %12 = vector.extract_strided_slice %6 {offsets = [5, 0], sizes = [1, 128], strides = [1, 1]} : vector<8x128xf32> to vector<1x128xf32>
    %c0_i32_4 = arith.constant 0 : i32
    %13 = arith.cmpi eq, %arg2, %c0_i32_4 : i32
    %14 = arith.extui %13 : i1 to i32
    %c0_i32_5 = arith.constant 0 : i32
    %15 = arith.cmpi ne, %14, %c0_i32_5 : i32
    scf.if %15 {
      %c0_24 = arith.constant 0 : index
      %c0_25 = arith.constant 0 : index
      %c0_26 = arith.constant 0 : index
      %37 = vector.load %arg10[%c0_24, %c0_25, %c0_26] : memref<1x8x128xf32, #tpu.memory_space<vmem>>, vector<1x8x128xf32>
      %38 = vector.shape_cast %37 : vector<1x8x128xf32> to vector<8x128xf32>
      %39 = arith.truncf %38 : vector<8x128xf32> to vector<8x128xbf16>
      %c0_27 = arith.constant 0 : index
      %c0_28 = arith.constant 0 : index
      %c0_29 = arith.constant 0 : index
      %40 = vector.load %arg4[%c0_27, %c0_28, %c0_29] : memref<1x128x384xbf16, #tpu.memory_space<vmem>>, vector<1x128x384xbf16>
      %41 = vector.shape_cast %40 : vector<1x128x384xbf16> to vector<128x384xbf16>
      %cst_30 = arith.constant dense<0.000000e+00> : vector<8x384xf32>
      %42 = tpu.matmul %39, %41, %cst_30 {dimension_numbers = #tpu.dot_dimension_numbers<[1], [0], [0], [1], [0, 0, 1, 1], [], []>} : vector<8x128xbf16>, vector<128x384xbf16>, vector<8x384xf32> -> vector<8x384xf32>
      %43 = vector.extract_strided_slice %42 {offsets = [0, 0], sizes = [8, 128], strides = [1, 1]} : vector<8x384xf32> to vector<8x128xf32>
      %cst_31 = arith.constant 0.0883883461 : f32
      %44 = vector.broadcast %cst_31 : f32 to vector<8x128xf32>
      %45 = arith.mulf %43, %44 : vector<8x128xf32>
      %c0_32 = arith.constant 0 : index
      %c0_33 = arith.constant 0 : index
      %c0_34 = arith.constant 0 : index
      %c0_35 = arith.constant 0 : index
      %46 = vector.load %arg5[%c0_32, %c0_33, %c0_34, %c0_35] : memref<1x4x32x128xbf16, #tpu.memory_space<vmem>>, vector<1x4x32x128xbf16>
      %47 = vector.shape_cast %46 : vector<1x4x32x128xbf16> to vector<4x32x128xbf16>
      %cst_36 = arith.constant 0.000000e+00 : f32
      %48 = vector.broadcast %cst_36 : f32 to vector<8x128xf32>
      %49 = vector.extract_strided_slice %45 {offsets = [0, 0], sizes = [8, 32], strides = [1, 1]} : vector<8x128xf32> to vector<8x32xf32>
      %50 = vector.shape_cast %49 : vector<8x32xf32> to vector<1x8x32xf32>
      %51 = arith.truncf %50 : vector<1x8x32xf32> to vector<1x8x32xbf16>
      %52 = vector.extract_strided_slice %42 {offsets = [0, 128], sizes = [8, 32], strides = [1, 1]} : vector<8x384xf32> to vector<8x32xf32>
      %53 = vector.shape_cast %52 : vector<8x32xf32> to vector<1x8x32xf32>
      %54 = arith.truncf %53 : vector<1x8x32xf32> to vector<1x8x32xbf16>
      %55 = vector.extract_strided_slice %42 {offsets = [0, 256], sizes = [8, 32], strides = [1, 1]} : vector<8x384xf32> to vector<8x32xf32>
      %56 = vector.shape_cast %55 : vector<8x32xf32> to vector<1x8x32xf32>
      %57 = arith.truncf %56 : vector<1x8x32xf32> to vector<1x8x32xbf16>
      "tpu.trace_start"() <{level = 10 : i32, message = "bqd,bkd->bqk"}> : () -> ()
      %cst_37 = arith.constant dense<0.000000e+00> : vector<1x8x8xf32>
      %58 = tpu.matmul %51, %54, %cst_37 {dimension_numbers = #tpu.dot_dimension_numbers<[2], [2], [1], [1], [0, 0, 0, 1, 1, 1], [0], [0]>} : vector<1x8x32xbf16>, vector<1x8x32xbf16>, vector<1x8x8xf32> -> vector<1x8x8xf32>
      "tpu.trace_stop"() : () -> ()
      %cst_38 = arith.constant dense<0xFF800000> : vector<1x8xf32>
      %59 = vector.multi_reduction <maximumf>, %58, %cst_38 [2] : vector<1x8x8xf32> to vector<1x8xf32>
      %60 = vector.shape_cast %59 : vector<1x8xf32> to vector<1x8x1xf32>
      %61 = vector.broadcast %60 : vector<1x8x1xf32> to vector<1x8x8xf32>
      %62 = arith.subf %58, %61 : vector<1x8x8xf32>
      %63 = math.exp %62 : vector<1x8x8xf32>
      %cst_39 = arith.constant dense<0.000000e+00> : vector<1x8xf32>
      %64 = vector.multi_reduction <add>, %63, %cst_39 [2] : vector<1x8x8xf32> to vector<1x8xf32>
      %65 = vector.shape_cast %64 : vector<1x8xf32> to vector<1x8x1xf32>
      %66 = arith.truncf %63 : vector<1x8x8xf32> to vector<1x8x8xbf16>
      "tpu.trace_start"() <{level = 10 : i32, message = "bqk,bkd->bqd"}> : () -> ()
      %cst_40 = arith.constant dense<0.000000e+00> : vector<1x8x32xf32>
      %67 = tpu.matmul %66, %57, %cst_40 {dimension_numbers = #tpu.dot_dimension_numbers<[2], [1], [1], [2], [0, 0, 0, 1, 1, 2], [0], [0]>} : vector<1x8x8xbf16>, vector<1x8x32xbf16>, vector<1x8x32xf32> -> vector<1x8x32xf32>
      "tpu.trace_stop"() : () -> ()
      %68 = tpu.reciprocal %65 {approx = true} : vector<1x8x1xf32> -> vector<1x8x1xf32>
      %69 = vector.broadcast %68 : vector<1x8x1xf32> to vector<1x8x32xf32>
      %70 = arith.mulf %67, %69 : vector<1x8x32xf32>
      %71 = vector.shape_cast %70 : vector<1x8x32xf32> to vector<8x32xf32>
      %72 = arith.truncf %71 : vector<8x32xf32> to vector<8x32xbf16>
      %73 = vector.extract_strided_slice %47 {offsets = [0, 0, 0], sizes = [1, 32, 128], strides = [1, 1, 1]} : vector<4x32x128xbf16> to vector<1x32x128xbf16>
      %74 = vector.shape_cast %73 : vector<1x32x128xbf16> to vector<32x128xbf16>
      %cst_41 = arith.constant dense<0.000000e+00> : vector<8x128xf32>
      %75 = tpu.matmul %72, %74, %cst_41 {dimension_numbers = #tpu.dot_dimension_numbers<[1], [0], [0], [1], [0, 0, 1, 1], [], []>} : vector<8x32xbf16>, vector<32x128xbf16>, vector<8x128xf32> -> vector<8x128xf32>
      %76 = arith.addf %48, %75 : vector<8x128xf32>
      %77 = vector.extract_strided_slice %45 {offsets = [0, 32], sizes = [8, 32], strides = [1, 1]} : vector<8x128xf32> to vector<8x32xf32>
      %78 = vector.shape_cast %77 : vector<8x32xf32> to vector<1x8x32xf32>
      %79 = arith.truncf %78 : vector<1x8x32xf32> to vector<1x8x32xbf16>
      %80 = vector.extract_strided_slice %42 {offsets = [0, 160], sizes = [8, 32], strides = [1, 1]} : vector<8x384xf32> to vector<8x32xf32>
      %81 = vector.shape_cast %80 : vector<8x32xf32> to vector<1x8x32xf32>
      %82 = arith.truncf %81 : vector<1x8x32xf32> to vector<1x8x32xbf16>
      %83 = vector.extract_strided_slice %42 {offsets = [0, 288], sizes = [8, 32], strides = [1, 1]} : vector<8x384xf32> to vector<8x32xf32>
      %84 = vector.shape_cast %83 : vector<8x32xf32> to vector<1x8x32xf32>
      %85 = arith.truncf %84 : vector<1x8x32xf32> to vector<1x8x32xbf16>
      "tpu.trace_start"() <{level = 10 : i32, message = "bqd,bkd->bqk"}> : () -> ()
      %cst_42 = arith.constant dense<0.000000e+00> : vector<1x8x8xf32>
      %86 = tpu.matmul %79, %82, %cst_42 {dimension_numbers = #tpu.dot_dimension_numbers<[2], [2], [1], [1], [0, 0, 0, 1, 1, 1], [0], [0]>} : vector<1x8x32xbf16>, vector<1x8x32xbf16>, vector<1x8x8xf32> -> vector<1x8x8xf32>
      "tpu.trace_stop"() : () -> ()
      %cst_43 = arith.constant dense<0xFF800000> : vector<1x8xf32>
      %87 = vector.multi_reduction <maximumf>, %86, %cst_43 [2] : vector<1x8x8xf32> to vector<1x8xf32>
      %88 = vector.shape_cast %87 : vector<1x8xf32> to vector<1x8x1xf32>
      %89 = vector.broadcast %88 : vector<1x8x1xf32> to vector<1x8x8xf32>
      %90 = arith.subf %86, %89 : vector<1x8x8xf32>
      %91 = math.exp %90 : vector<1x8x8xf32>
      %cst_44 = arith.constant dense<0.000000e+00> : vector<1x8xf32>
      %92 = vector.multi_reduction <add>, %91, %cst_44 [2] : vector<1x8x8xf32> to vector<1x8xf32>
      %93 = vector.shape_cast %92 : vector<1x8xf32> to vector<1x8x1xf32>
      %94 = arith.truncf %91 : vector<1x8x8xf32> to vector<1x8x8xbf16>
      "tpu.trace_start"() <{level = 10 : i32, message = "bqk,bkd->bqd"}> : () -> ()
      %cst_45 = arith.constant dense<0.000000e+00> : vector<1x8x32xf32>
      %95 = tpu.matmul %94, %85, %cst_45 {dimension_numbers = #tpu.dot_dimension_numbers<[2], [1], [1], [2], [0, 0, 0, 1, 1, 2], [0], [0]>} : vector<1x8x8xbf16>, vector<1x8x32xbf16>, vector<1x8x32xf32> -> vector<1x8x32xf32>
      "tpu.trace_stop"() : () -> ()
      %96 = tpu.reciprocal %93 {approx = true} : vector<1x8x1xf32> -> vector<1x8x1xf32>
      %97 = vector.broadcast %96 : vector<1x8x1xf32> to vector<1x8x32xf32>
      %98 = arith.mulf %95, %97 : vector<1x8x32xf32>
      %99 = vector.shape_cast %98 : vector<1x8x32xf32> to vector<8x32xf32>
      %100 = arith.truncf %99 : vector<8x32xf32> to vector<8x32xbf16>
      %101 = vector.extract_strided_slice %47 {offsets = [1, 0, 0], sizes = [1, 32, 128], strides = [1, 1, 1]} : vector<4x32x128xbf16> to vector<1x32x128xbf16>
      %102 = vector.shape_cast %101 : vector<1x32x128xbf16> to vector<32x128xbf16>
      %cst_46 = arith.constant dense<0.000000e+00> : vector<8x128xf32>
      %103 = tpu.matmul %100, %102, %cst_46 {dimension_numbers = #tpu.dot_dimension_numbers<[1], [0], [0], [1], [0, 0, 1, 1], [], []>} : vector<8x32xbf16>, vector<32x128xbf16>, vector<8x128xf32> -> vector<8x128xf32>
      %104 = arith.addf %76, %103 : vector<8x128xf32>
      %105 = vector.extract_strided_slice %45 {offsets = [0, 64], sizes = [8, 32], strides = [1, 1]} : vector<8x128xf32> to vector<8x32xf32>
      %106 = vector.shape_cast %105 : vector<8x32xf32> to vector<1x8x32xf32>
      %107 = arith.truncf %106 : vector<1x8x32xf32> to vector<1x8x32xbf16>
      %108 = vector.extract_strided_slice %42 {offsets = [0, 192], sizes = [8, 32], strides = [1, 1]} : vector<8x384xf32> to vector<8x32xf32>
      %109 = vector.shape_cast %108 : vector<8x32xf32> to vector<1x8x32xf32>
      %110 = arith.truncf %109 : vector<1x8x32xf32> to vector<1x8x32xbf16>
      %111 = vector.extract_strided_slice %42 {offsets = [0, 320], sizes = [8, 32], strides = [1, 1]} : vector<8x384xf32> to vector<8x32xf32>
      %112 = vector.shape_cast %111 : vector<8x32xf32> to vector<1x8x32xf32>
      %113 = arith.truncf %112 : vector<1x8x32xf32> to vector<1x8x32xbf16>
      "tpu.trace_start"() <{level = 10 : i32, message = "bqd,bkd->bqk"}> : () -> ()
      %cst_47 = arith.constant dense<0.000000e+00> : vector<1x8x8xf32>
      %114 = tpu.matmul %107, %110, %cst_47 {dimension_numbers = #tpu.dot_dimension_numbers<[2], [2], [1], [1], [0, 0, 0, 1, 1, 1], [0], [0]>} : vector<1x8x32xbf16>, vector<1x8x32xbf16>, vector<1x8x8xf32> -> vector<1x8x8xf32>
      "tpu.trace_stop"() : () -> ()
      %cst_48 = arith.constant dense<0xFF800000> : vector<1x8xf32>
      %115 = vector.multi_reduction <maximumf>, %114, %cst_48 [2] : vector<1x8x8xf32> to vector<1x8xf32>
      %116 = vector.shape_cast %115 : vector<1x8xf32> to vector<1x8x1xf32>
      %117 = vector.broadcast %116 : vector<1x8x1xf32> to vector<1x8x8xf32>
      %118 = arith.subf %114, %117 : vector<1x8x8xf32>
      %119 = math.exp %118 : vector<1x8x8xf32>
      %cst_49 = arith.constant dense<0.000000e+00> : vector<1x8xf32>
      %120 = vector.multi_reduction <add>, %119, %cst_49 [2] : vector<1x8x8xf32> to vector<1x8xf32>
      %121 = vector.shape_cast %120 : vector<1x8xf32> to vector<1x8x1xf32>
      %122 = arith.truncf %119 : vector<1x8x8xf32> to vector<1x8x8xbf16>
      "tpu.trace_start"() <{level = 10 : i32, message = "bqk,bkd->bqd"}> : () -> ()
      %cst_50 = arith.constant dense<0.000000e+00> : vector<1x8x32xf32>
      %123 = tpu.matmul %122, %113, %cst_50 {dimension_numbers = #tpu.dot_dimension_numbers<[2], [1], [1], [2], [0, 0, 0, 1, 1, 2], [0], [0]>} : vector<1x8x8xbf16>, vector<1x8x32xbf16>, vector<1x8x32xf32> -> vector<1x8x32xf32>
      "tpu.trace_stop"() : () -> ()
      %124 = tpu.reciprocal %121 {approx = true} : vector<1x8x1xf32> -> vector<1x8x1xf32>
      %125 = vector.broadcast %124 : vector<1x8x1xf32> to vector<1x8x32xf32>
      %126 = arith.mulf %123, %125 : vector<1x8x32xf32>
      %127 = vector.shape_cast %126 : vector<1x8x32xf32> to vector<8x32xf32>
      %128 = arith.truncf %127 : vector<8x32xf32> to vector<8x32xbf16>
      %129 = vector.extract_strided_slice %47 {offsets = [2, 0, 0], sizes = [1, 32, 128], strides = [1, 1, 1]} : vector<4x32x128xbf16> to vector<1x32x128xbf16>
      %130 = vector.shape_cast %129 : vector<1x32x128xbf16> to vector<32x128xbf16>
      %cst_51 = arith.constant dense<0.000000e+00> : vector<8x128xf32>
      %131 = tpu.matmul %128, %130, %cst_51 {dimension_numbers = #tpu.dot_dimension_numbers<[1], [0], [0], [1], [0, 0, 1, 1], [], []>} : vector<8x32xbf16>, vector<32x128xbf16>, vector<8x128xf32> -> vector<8x128xf32>
      %132 = arith.addf %104, %131 : vector<8x128xf32>
      %133 = vector.extract_strided_slice %45 {offsets = [0, 96], sizes = [8, 32], strides = [1, 1]} : vector<8x128xf32> to vector<8x32xf32>
      %134 = vector.shape_cast %133 : vector<8x32xf32> to vector<1x8x32xf32>
      %135 = arith.truncf %134 : vector<1x8x32xf32> to vector<1x8x32xbf16>
      %136 = vector.extract_strided_slice %42 {offsets = [0, 224], sizes = [8, 32], strides = [1, 1]} : vector<8x384xf32> to vector<8x32xf32>
      %137 = vector.shape_cast %136 : vector<8x32xf32> to vector<1x8x32xf32>
      %138 = arith.truncf %137 : vector<1x8x32xf32> to vector<1x8x32xbf16>
      %139 = vector.extract_strided_slice %42 {offsets = [0, 352], sizes = [8, 32], strides = [1, 1]} : vector<8x384xf32> to vector<8x32xf32>
      %140 = vector.shape_cast %139 : vector<8x32xf32> to vector<1x8x32xf32>
      %141 = arith.truncf %140 : vector<1x8x32xf32> to vector<1x8x32xbf16>
      "tpu.trace_start"() <{level = 10 : i32, message = "bqd,bkd->bqk"}> : () -> ()
      %cst_52 = arith.constant dense<0.000000e+00> : vector<1x8x8xf32>
      %142 = tpu.matmul %135, %138, %cst_52 {dimension_numbers = #tpu.dot_dimension_numbers<[2], [2], [1], [1], [0, 0, 0, 1, 1, 1], [0], [0]>} : vector<1x8x32xbf16>, vector<1x8x32xbf16>, vector<1x8x8xf32> -> vector<1x8x8xf32>
      "tpu.trace_stop"() : () -> ()
      %cst_53 = arith.constant dense<0xFF800000> : vector<1x8xf32>
      %143 = vector.multi_reduction <maximumf>, %142, %cst_53 [2] : vector<1x8x8xf32> to vector<1x8xf32>
      %144 = vector.shape_cast %143 : vector<1x8xf32> to vector<1x8x1xf32>
      %145 = vector.broadcast %144 : vector<1x8x1xf32> to vector<1x8x8xf32>
      %146 = arith.subf %142, %145 : vector<1x8x8xf32>
      %147 = math.exp %146 : vector<1x8x8xf32>
      %cst_54 = arith.constant dense<0.000000e+00> : vector<1x8xf32>
      %148 = vector.multi_reduction <add>, %147, %cst_54 [2] : vector<1x8x8xf32> to vector<1x8xf32>
      %149 = vector.shape_cast %148 : vector<1x8xf32> to vector<1x8x1xf32>
      %150 = arith.truncf %147 : vector<1x8x8xf32> to vector<1x8x8xbf16>
      "tpu.trace_start"() <{level = 10 : i32, message = "bqk,bkd->bqd"}> : () -> ()
      %cst_55 = arith.constant dense<0.000000e+00> : vector<1x8x32xf32>
      %151 = tpu.matmul %150, %141, %cst_55 {dimension_numbers = #tpu.dot_dimension_numbers<[2], [1], [1], [2], [0, 0, 0, 1, 1, 2], [0], [0]>} : vector<1x8x8xbf16>, vector<1x8x32xbf16>, vector<1x8x32xf32> -> vector<1x8x32xf32>
      "tpu.trace_stop"() : () -> ()
      %152 = tpu.reciprocal %149 {approx = true} : vector<1x8x1xf32> -> vector<1x8x1xf32>
      %153 = vector.broadcast %152 : vector<1x8x1xf32> to vector<1x8x32xf32>
      %154 = arith.mulf %151, %153 : vector<1x8x32xf32>
      %155 = vector.shape_cast %154 : vector<1x8x32xf32> to vector<8x32xf32>
      %156 = arith.truncf %155 : vector<8x32xf32> to vector<8x32xbf16>
      %157 = vector.extract_strided_slice %47 {offsets = [3, 0, 0], sizes = [1, 32, 128], strides = [1, 1, 1]} : vector<4x32x128xbf16> to vector<1x32x128xbf16>
      %158 = vector.shape_cast %157 : vector<1x32x128xbf16> to vector<32x128xbf16>
      %cst_56 = arith.constant dense<0.000000e+00> : vector<8x128xf32>
      %159 = tpu.matmul %156, %158, %cst_56 {dimension_numbers = #tpu.dot_dimension_numbers<[1], [0], [0], [1], [0, 0, 1, 1], [], []>} : vector<8x32xbf16>, vector<32x128xbf16>, vector<8x128xf32> -> vector<8x128xf32>
      %160 = arith.addf %132, %159 : vector<8x128xf32>
      %161 = vector.broadcast %7 : vector<1x128xf32> to vector<8x128xf32>
      %162 = arith.addf %160, %161 : vector<8x128xf32>
      %163 = arith.addf %162, %38 : vector<8x128xf32>
      %cst_57 = arith.constant dense<0.000000e+00> : vector<8xf32>
      %164 = vector.multi_reduction <add>, %163, %cst_57 [1] : vector<8x128xf32> to vector<8xf32>
      %165 = vector.shape_cast %164 : vector<8xf32> to vector<8x1xf32>
      %cst_58 = arith.constant 1.280000e+02 : f32
      %166 = vector.broadcast %cst_58 : f32 to vector<8x1xf32>
      %167 = arith.divf %165, %166 : vector<8x1xf32>
      %168 = vector.broadcast %167 : vector<8x1xf32> to vector<8x128xf32>
      %169 = arith.subf %163, %168 : vector<8x128xf32>
      %170 = arith.mulf %169, %169 : vector<8x128xf32>
      %cst_59 = arith.constant dense<0.000000e+00> : vector<8xf32>
      %171 = vector.multi_reduction <add>, %170, %cst_59 [1] : vector<8x128xf32> to vector<8xf32>
      %172 = vector.shape_cast %171 : vector<8xf32> to vector<8x1xf32>
      %cst_60 = arith.constant 1.280000e+02 : f32
      %173 = vector.broadcast %cst_60 : f32 to vector<8x1xf32>
      %174 = arith.divf %172, %173 : vector<8x1xf32>
      %175 = vector.broadcast %167 : vector<8x1xf32> to vector<8x128xf32>
      %176 = arith.subf %163, %175 : vector<8x128xf32>
      %cst_61 = arith.constant 9.99999974E-6 : f32
      %177 = vector.broadcast %cst_61 : f32 to vector<8x1xf32>
      %178 = arith.addf %174, %177 : vector<8x1xf32>
      %179 = math.rsqrt %178 : vector<8x1xf32>
      %180 = vector.broadcast %179 : vector<8x1xf32> to vector<8x128xf32>
      %181 = arith.mulf %176, %180 : vector<8x128xf32>
      %182 = vector.broadcast %8 : vector<1x128xf32> to vector<8x128xf32>
      %183 = arith.mulf %181, %182 : vector<8x128xf32>
      %184 = vector.broadcast %9 : vector<1x128xf32> to vector<8x128xf32>
      %185 = arith.addf %183, %184 : vector<8x128xf32>
      %c0_62 = arith.constant 0 : index
      %c0_63 = arith.constant 0 : index
      %186 = vector.load %arg11[%c0_62, %c0_63] : memref<8x128xf32, #tpu.memory_space<vmem>>, vector<8x128xf32>
      tpu.vector_store %arg11[%c0_62, %c0_63], %185 {strides = array<i32>} : memref<8x128xf32, #tpu.memory_space<vmem>>, vector<8x128xf32>,
      %cst_64 = arith.constant 0.000000e+00 : f32
      %187 = vector.broadcast %cst_64 : f32 to vector<8x128xf32>
      %c0_65 = arith.constant 0 : index
      %c0_66 = arith.constant 0 : index
      %188 = vector.load %arg12[%c0_65, %c0_66] : memref<8x128xf32, #tpu.memory_space<vmem>>, vector<8x128xf32>
      tpu.vector_store %arg12[%c0_65, %c0_66], %187 {strides = array<i32>} : memref<8x128xf32, #tpu.memory_space<vmem>>, vector<8x128xf32>,
    } else {
    }
    %c0_6 = arith.constant 0 : index
    %c0_7 = arith.constant 0 : index
    %16 = vector.load %arg11[%c0_6, %c0_7] : memref<8x128xf32, #tpu.memory_space<vmem>>, vector<8x128xf32>
    %17 = arith.truncf %16 : vector<8x128xf32> to vector<8x128xbf16>
    %c0_8 = arith.constant 0 : index
    %c0_9 = arith.constant 0 : index
    %c0_10 = arith.constant 0 : index
    %18 = vector.load %arg6[%c0_8, %c0_9, %c0_10] : memref<1x128x256xbf16, #tpu.memory_space<vmem>>, vector<1x128x256xbf16>
    %19 = vector.shape_cast %18 : vector<1x128x256xbf16> to vector<128x256xbf16>
    %cst = arith.constant dense<0.000000e+00> : vector<8x256xf32>
    %20 = tpu.matmul %17, %19, %cst {dimension_numbers = #tpu.dot_dimension_numbers<[1], [0], [0], [1], [0, 0, 1, 1], [], []>} : vector<8x128xbf16>, vector<128x256xbf16>, vector<8x256xf32> -> vector<8x256xf32>
    %c0_11 = arith.constant 0 : index
    %c0_12 = arith.constant 0 : index
    %c0_13 = arith.constant 0 : index
    %21 = vector.load %arg8[%c0_11, %c0_12, %c0_13] : memref<1x1x256xf32, #tpu.memory_space<vmem>>, vector<1x1x256xf32>
    %22 = vector.shape_cast %21 : vector<1x1x256xf32> to vector<1x256xf32>
    %23 = vector.broadcast %22 : vector<1x256xf32> to vector<8x256xf32>
    %24 = arith.addf %20, %23 : vector<8x256xf32>
    %cst_14 = arith.constant 0.000000e+00 : f32
    %25 = vector.broadcast %cst_14 : f32 to vector<8x256xf32>
    %26 = arith.maximumf %24, %25 : vector<8x256xf32>
    %c0_15 = arith.constant 0 : index
    %c0_16 = arith.constant 0 : index
    %27 = vector.load %arg12[%c0_15, %c0_16] : memref<8x128xf32, #tpu.memory_space<vmem>>, vector<8x128xf32>
    %28 = arith.truncf %26 : vector<8x256xf32> to vector<8x256xbf16>
    %c0_17 = arith.constant 0 : index
    %c0_18 = arith.constant 0 : index
    %c0_19 = arith.constant 0 : index
    %29 = vector.load %arg7[%c0_17, %c0_18, %c0_19] : memref<1x256x128xbf16, #tpu.memory_space<vmem>>, vector<1x256x128xbf16>
    %30 = vector.shape_cast %29 : vector<1x256x128xbf16> to vector<256x128xbf16>
    %cst_20 = arith.constant dense<0.000000e+00> : vector<8x128xf32>
    %31 = tpu.matmul %28, %30, %cst_20 {dimension_numbers = #tpu.dot_dimension_numbers<[1], [0], [0], [1], [0, 0, 1, 1], [], []>} : vector<8x256xbf16>, vector<256x128xbf16>, vector<8x128xf32> -> vector<8x128xf32>
    %32 = arith.addf %27, %31 : vector<8x128xf32>
    %c0_21 = arith.constant 0 : index
    %c0_22 = arith.constant 0 : index
    %33 = vector.load %arg12[%c0_21, %c0_22] : memref<8x128xf32, #tpu.memory_space<vmem>>, vector<8x128xf32>
    tpu.vector_store %arg12[%c0_21, %c0_22], %32 {strides = array<i32>} : memref<8x128xf32, #tpu.memory_space<vmem>>, vector<8x128xf32>,
    %c1_i32 = arith.constant 1 : i32
    %34 = arith.cmpi eq, %arg2, %c1_i32 : i32
    %35 = arith.extui %34 : i1 to i32
    %c0_i32_23 = arith.constant 0 : i32
    %36 = arith.cmpi ne, %35, %c0_i32_23 : i32
    scf.if %36 {
      %c0_24 = arith.constant 0 : index
      %c0_25 = arith.constant 0 : index
      %37 = vector.load %arg11[%c0_24, %c0_25] : memref<8x128xf32, #tpu.memory_space<vmem>>, vector<8x128xf32>
      %c0_26 = arith.constant 0 : index
      %c0_27 = arith.constant 0 : index
      %38 = vector.load %arg12[%c0_26, %c0_27] : memref<8x128xf32, #tpu.memory_space<vmem>>, vector<8x128xf32>
      %39 = vector.broadcast %12 : vector<1x128xf32> to vector<8x128xf32>
      %40 = arith.addf %38, %39 : vector<8x128xf32>
      %41 = arith.addf %40, %37 : vector<8x128xf32>
      %cst_28 = arith.constant dense<0.000000e+00> : vector<8xf32>
      %42 = vector.multi_reduction <add>, %41, %cst_28 [1] : vector<8x128xf32> to vector<8xf32>
      %43 = vector.shape_cast %42 : vector<8xf32> to vector<8x1xf32>
      %cst_29 = arith.constant 1.280000e+02 : f32
      %44 = vector.broadcast %cst_29 : f32 to vector<8x1xf32>
      %45 = arith.divf %43, %44 : vector<8x1xf32>
      %46 = vector.broadcast %45 : vector<8x1xf32> to vector<8x128xf32>
      %47 = arith.subf %41, %46 : vector<8x128xf32>
      %48 = arith.mulf %47, %47 : vector<8x128xf32>
      %cst_30 = arith.constant dense<0.000000e+00> : vector<8xf32>
      %49 = vector.multi_reduction <add>, %48, %cst_30 [1] : vector<8x128xf32> to vector<8xf32>
      %50 = vector.shape_cast %49 : vector<8xf32> to vector<8x1xf32>
      %cst_31 = arith.constant 1.280000e+02 : f32
      %51 = vector.broadcast %cst_31 : f32 to vector<8x1xf32>
      %52 = arith.divf %50, %51 : vector<8x1xf32>
      %53 = vector.broadcast %45 : vector<8x1xf32> to vector<8x128xf32>
      %54 = arith.subf %41, %53 : vector<8x128xf32>
      %cst_32 = arith.constant 9.99999974E-6 : f32
      %55 = vector.broadcast %cst_32 : f32 to vector<8x1xf32>
      %56 = arith.addf %52, %55 : vector<8x1xf32>
      %57 = math.rsqrt %56 : vector<8x1xf32>
      %58 = vector.broadcast %57 : vector<8x1xf32> to vector<8x128xf32>
      %59 = arith.mulf %54, %58 : vector<8x128xf32>
      %60 = vector.broadcast %10 : vector<1x128xf32> to vector<8x128xf32>
      %61 = arith.mulf %59, %60 : vector<8x128xf32>
      %62 = vector.broadcast %11 : vector<1x128xf32> to vector<8x128xf32>
      %63 = arith.addf %61, %62 : vector<8x128xf32>
      %64 = vector.shape_cast %63 : vector<8x128xf32> to vector<1x8x128xf32>
      %c0_33 = arith.constant 0 : index
      %c0_34 = arith.constant 0 : index
      %c0_35 = arith.constant 0 : index
      %65 = vector.load %arg10[%c0_33, %c0_34, %c0_35] : memref<1x8x128xf32, #tpu.memory_space<vmem>>, vector<1x8x128xf32>
      tpu.vector_store %arg10[%c0_33, %c0_34, %c0_35], %64 {strides = array<i32>} : memref<1x8x128xf32, #tpu.memory_space<vmem>>, vector<1x8x128xf32>,
    } else {
    }
    return
  }
  func.func @transform_0(%arg0: i32, %arg1: i32, %arg2: i32) -> (i32, i32, i32) {
    %c0_i32 = arith.constant 0 : i32
    %c0_i32_0 = arith.constant 0 : i32
    %c0_i32_1 = arith.constant 0 : i32
    return %arg0, %c0_i32, %c0_i32_0 : i32, i32, i32
  }
  func.func @transform_1(%arg0: i32, %arg1: i32, %arg2: i32) -> (i32, i32, i32) {
    %c0_i32 = arith.constant 0 : i32
    %c0_i32_0 = arith.constant 0 : i32
    %c0_i32_1 = arith.constant 0 : i32
    return %arg1, %c0_i32, %c0_i32_0 : i32, i32, i32
  }
  func.func @transform_2(%arg0: i32, %arg1: i32, %arg2: i32) -> (i32, i32, i32, i32) {
    %c0_i32 = arith.constant 0 : i32
    %c0_i32_0 = arith.constant 0 : i32
    %c0_i32_1 = arith.constant 0 : i32
    %c0_i32_2 = arith.constant 0 : i32
    return %arg1, %c0_i32, %c0_i32_0, %c0_i32_1 : i32, i32, i32, i32
  }
  func.func @transform_3(%arg0: i32, %arg1: i32, %arg2: i32) -> (i32, i32, i32) {
    %c0_i32 = arith.constant 0 : i32
    %c0_i32_0 = arith.constant 0 : i32
    return %arg1, %c0_i32, %arg2 : i32, i32, i32
  }
  func.func @transform_4(%arg0: i32, %arg1: i32, %arg2: i32) -> (i32, i32, i32) {
    %c0_i32 = arith.constant 0 : i32
    %c0_i32_0 = arith.constant 0 : i32
    return %arg1, %arg2, %c0_i32 : i32, i32, i32
  }
  func.func @transform_5(%arg0: i32, %arg1: i32, %arg2: i32) -> (i32, i32, i32) {
    %c0_i32 = arith.constant 0 : i32
    %c0_i32_0 = arith.constant 0 : i32
    return %arg1, %c0_i32, %arg2 : i32, i32, i32
  }
  func.func @transform_6(%arg0: i32, %arg1: i32, %arg2: i32) -> (i32, i32, i32) {
    %c0_i32 = arith.constant 0 : i32
    %c0_i32_0 = arith.constant 0 : i32
    %c0_i32_1 = arith.constant 0 : i32
    return %arg1, %c0_i32, %c0_i32_0 : i32, i32, i32
  }
  func.func @transform_7(%arg0: i32, %arg1: i32, %arg2: i32) -> (i32, i32, i32) {
    %c0_i32 = arith.constant 0 : i32
    %c0_i32_0 = arith.constant 0 : i32
    %c0_i32_1 = arith.constant 0 : i32
    return %arg0, %c0_i32, %c0_i32_0 : i32, i32, i32
  }
}

</mosaic_0001>

<bundles_post_ra>
// kernel: encoder_forward.1
= control target key start
LH: loop header
LB: loop body
LE: loop exit
PB: predicated region body
PF: predicated region fallthrough
CT: control target
= control target key end

     0   :  { %s3026_s0 = inlined_call_operand.vmem [shape: f32[2,8,128], index: 0, kind: input, shape index: {}]   ;;  %s3027_s1 = inlined_call_operand.hbm [shape: bf16[2,128,384], index: 1, kind: input, shape index: {}]   ;;  %s3028_s2 = inlined_call_operand.vmem [shape: bf16[2,4,32,128], index: 2, kind: input, shape index: {}]   ;;  %s3029_s3 = inlined_call_operand.hbm [shape: bf16[2,128,512], index: 3, kind: input, shape index: {}]   ;;  %s3030_s4 = inlined_call_operand.hbm [shape: bf16[2,512,128], index: 4, kind: input, shape index: {}]   ;;  %s3031_s5 = inlined_call_operand.vmem [shape: f32[2,1,512], index: 5, kind: input, shape index: {}]   ;;  %s3032_s6 = inlined_call_operand.vmem [shape: f32[2,8,128], index: 6, kind: input, shape index: {}]   ;;  %s3033_s7 = inlined_call_operand.hbm [shape: f32[2,8,128], index: 7, kind: output, shape index: {}]  }
   0x1   :  { %3056 = sst [smem:[#allocation32_spill]] %s3026_s0 }
   0x2   :  { %3057 = sst [smem:[#allocation33_spill]] %s3028_s2 }
   0x3   :  { %3058 = sst [smem:[#allocation34_spill]] %s3029_s3 }
   0x4   :  { %3059 = sst [smem:[#allocation35_spill]] %s3031_s5 }
   0x5   :  { %3060 = sst [smem:[#allocation36_spill]] %s3032_s6 }
   0x6   :  { %3061 = sst [smem:[#allocation37_spill]] %s3033_s7 }
   0x7   :  { %12 = vsyncpa [#allocation5], 0 }
   0x8   :  { %14 = vsyncpa [#allocation5 + $0x1], 0 }
   0x9   :  { %15 = vsyncpa [#allocation8], 0 }
   0xa   :  { %17 = vsyncpa [#allocation8 + $0x1], 0 }
   0xb   :  { %18 = vsyncpa [#allocation6], 0 }
   0xc   :  { %20 = vsyncpa [#allocation6 + $0x1], 0  ;;  %s2514_s24 = smov 0   ;;  %s2516_s25 = smov 0  }
   0xd   :  { %s2518_s26 = smov 0   ;;  %s2520_s27 = smov 0  }
   0xe   :  { %s2522_s28 = smov 0   ;;  %s2524_s29 = smov 0  }
   0xf   :  { %s2526_s30 = smov 0   ;;  %s2528_s8 = smov 0  }
  0x10   :  { %s2530_s9 = smov 0   ;;  %s2532_s10 = smov 0  }
  0x11   :  { %s2534_s11 = smov 0   ;;  %s2536_s12 = smov 0  }
  0x12   :  { %s2538_s13 = smov 0   ;;  %s2540_s14 = smov 0  }
  0x13   :  { %s2542_s15 = smov 0   ;;  %s2544_s16 = smov 0  }
  0x14 LB: > { %3062 = sst [smem:[#allocation14_spill]] %s2399_s24  ;;  %s38_s17 = sadd.s32 1, %s2447_s13  ;;  %s2459_s16 = sphi %s2544_s16, %s26_s16   ;;  %s2455_s15 = sphi %s2542_s15, %s3123_s15   ;;  %s2451_s14 = sphi %s2540_s14, %s3132_s14   ;;  %s2447_s13 = sphi %s2538_s13, %s3131_s13   ;;  %s2443_s12 = sphi %s2536_s12, %s3120_s12   ;;  %s2439_s11 = sphi %s2534_s11, %s3130_s11   ;;  %s2435_s10 = sphi %s2532_s10, %s3129_s10   ;;  %s2431_s9 = sphi %s2530_s9, %s3119_s9   ;;  %s2427_s8 = sphi %s2528_s8, %s3128_s8   ;;  %s2423_s30 = sphi %s2526_s30, %s3127_s30   ;;  %s2419_s29 = sphi %s2524_s29, %s3117_s29   ;;  %s2415_s28 = sphi %s2522_s28, %s3126_s28   ;;  %s2411_s27 = sphi %s2520_s27, %s3125_s27   ;;  %s2407_s26 = sphi %s2518_s26, %s3115_s26   ;;  %s2403_s25 = sphi %s2516_s25, %s3114_s25   ;;  %s2399_s24 = sphi %s2514_s24, %s3113_s24  }
  0x15   : > { %3063 = sst [smem:[#allocation15_spill]] %s2403_s25  ;;  %s41_s18 = sadd.s32 1, %s2451_s14 }
  0x16   : > { %3064 = sst [smem:[#allocation16_spill]] %s2407_s26  ;;  %p39_p0 = scmp.ge.s32.totalorder %s38_s17, 2 }
  0x17   : > { %3065 = sst [smem:[#allocation17_spill]] %s2419_s29  ;;  %s45_s19 = sadd.s32 1, %s2455_s15 }
  0x18   : > { %3066 = sst [smem:[#allocation18_spill]] %s2431_s9  ;;  %p86_p1 = scmp.eq.s32.totalorder %s2459_s16, 0 }
  0x19   : > { %3067 = sst [smem:[#allocation19_spill]] %s2435_s10  ;;  %s132_s20 = sadd.s32 1, %s2419_s29 }
  0x1a   : > { %3068 = sst [smem:[#allocation20_spill]] %s2439_s11  ;;  %s3134_s17 = smov (%p39_p0, %s38_s17), 0 }
  0x1b   : > { %3069 = sst [smem:[#allocation21_spill]] %s2443_s12  ;;  %s3136_s18 = smov (!%p39_p0, %s41_s18), %s2451_s14 }
  0x1c   : > { %3070 = sst [smem:[#allocation22_spill]] %s2455_s15  ;;  %s128_s21 = ssub.s32 %s2447_s13, %s3134_s17 }
  0x1d   : > { %3071 = sst [smem:[#allocation23_spill]] %s2459_s16  ;;  %p139_p2 = scmp.ne.s32.totalorder %s2419_s29, %s2415_s28 }
  0x1e   : > { %3072 = sst [smem:[#allocation24_spill]] %s3134_s17  ;;  %p43_p3 = scmp.ge.s32.totalorder %s3136_s18, 2 }
  0x1f   : > { %p145_p4 = scmp.ne.s32.totalorder %s2415_s28, %s2411_s27  ;;  %p2610_p5 = por %p139_p2, %p86_p1 }
  0x20   : > { %s3138_s18 = smov (%p43_p3, %s3136_s18), 0  ;;  %s3140_s19 = smov (!%p43_p3, %s45_s19), %s2455_s15 }
  0x21   : > { %3074 = sst [smem:[#allocation25_spill]] %s3138_s18  ;;  %s2619_s23 = ssub.s32 %s2451_s14, %s3138_s18 }
  0x22   : > { %p3042_p6 = scmp.lt.s32.totalorder %s2459_s16, 8  ;;  %p47_p7 = scmp.ge.s32.totalorder %s3140_s19, 2 }
  0x23   : > { %s129_s17 = sor.u32 %s128_s21, %s2619_s23  ;;  %s314_s7 = sand.u32 1, %s2459_s16  }
  0x24   : > { %p130_p8 = scmp.eq.s32.totalorder %s129_s17, 0  ;;  %s3142_s19 = smov (%p47_p7, %s3140_s19), 0 }
  0x25   : > { %3075 = sst [smem:[#allocation26_spill]] %s3142_s19  ;;  %s237_s6 = ssub.s32 %s2455_s15, %s3142_s19 }
  0x26   : > { %s2627_s5 = scalar_select %p130_p8, %s2419_s29, %s132_s20  }
  0x27   : > { %p2631_p9 = scmp.eq.s32.totalorder %s237_s6, 0  ;;  %s316_s18 = sand.u32 1, %s2419_s29  }
  0x28   : > { %3076 = sst [smem:[#allocation27_spill]] %s2627_s5  ;;  %s2636_s0 = sshll.u32 %s316_s18, 7 }
  0x29   : > { %s1655_s10 = sshll.u32 %s2447_s13, 1  ;;  %s3043_s17 = sshll.u32 %s2451_s14, 6 }
  0x2a   : > { %s323_s21 = sadd.s32 %s3043_s17, %s1655_s10  ;;  %s318_s11 = scalar_lea.vmem [#allocation7], %s2636_s0 }
  0x2b   : > { %s328_s12 = sshll.u32 %s318_s11, 4  ;;  %s1657_s20 = sshll.u32 %s323_s21, 2  ;;  %s329_s12 = int_to_ptr.vmem [resolvable:$true] %s328_s12 }
  0x2c   : > { %s3078_s3 = sld [smem:[#allocation34_spill]]  ;;  %p2650_p10 = pnand %p3042_p6, %p2610_p5 }
  0x2d   : > { %s2654_s11 = scalar_lea.sflag [#allocation8], %s314_s7  ;;  %s2461_s19 = smov 256  }
  0x2e   : > { %s2462_s22 = smov 128   ;;  %s2463_s21 = smov 8  }
  0x2f   : > { %p1662_p11 = scmp.ge.s32.totalorder %s2459_s16, 1  ;;  %p379_p12 = scmp.lt.s32.totalorder %s2459_s16, 9 }
  0x30   : > { %s2666_s7 = sadd.s32 4294967295, %s2459_s16   ;;  %s1650_s6 = sadd.s32 4294967294, %s2459_s16  }
  0x31   : > { %p2661_p13 = pnand %p1662_p11, %p379_p12  ;;  %p76_p0 = scmp.eq.s32.totalorder %s2619_s23, 0 }
  0x32   : > { %s325_s18 = scalar_lea.hbm %s3078_s3, %s1657_s20  ;;  %p85_p2 = scmp.ne.s32.totalorder %s2431_s9, %s2427_s8 }
  0x33   : > { %s326_s10 = sshll.u32 %s325_s18, 4  ;;  %p91_p5 = scmp.ne.s32.totalorder %s2427_s8, %s2423_s30  ;;  %s327_s10 = int_to_ptr.hbm [resolvable:$true] %s326_s10 }
  0x34   : > { %2028 = dma.hbm_to_vmem [thread:$0]  (!%p2650_p10), %s327_s10, 2048, %s329_s12, %s2654_s11, %s2461_s19, %s2462_s22, %s2463_s21  }
  0x35   : > { %s78_s12 = sadd.s32 1, %s2431_s9  ;;  %p2678_p3 = por %p86_p1, %p85_p2 }
  0x36   : > { %s2674_s18 = scalar_select %p76_p0, %s2431_s9, %s78_s12  }
  0x37   : > { %p92_p7 = scmp.eq.s32.totalorder %s2666_s7, 0  ;;  %s240_s19 = sadd.s32 1, %s2407_s26 }
  0x38   : > { %3081 = sst [smem:[#allocation28_spill]] %s2674_s18  ;;  %p250_p1 = scmp.ne.s32.totalorder %s2407_s26, %s2403_s25 }
  0x39   : > { %s2689_s22 = scalar_select %p2631_p9, %s2407_s26, %s240_s19  }
  0x3a   : > { %p2691_p8 = por %p92_p7, %p91_p5  ;;  %p2698_p11 = por %p145_p4, %p92_p7 }
  0x3b   : > { %3083 = sst [smem:[#allocation29_spill]] %s2689_s22  ;;  %p251_p12 = scmp.eq.s32.totalorder %s2666_s7, 7 }
  0x3c   : > { %p256_p0 = scmp.ne.s32.totalorder %s2403_s25, %s2399_s24  ;;  %p257_p2 = scmp.eq.s32.totalorder %s1650_s6, 7 }
  0x3d   : > { %p2707_p6 = por %p251_p12, %p250_p1  ;;  %s284_s2 = sand.u32 1, %s2431_s9  }
  0x3e   : > { %p2712_p9 = por %p257_p2, %p256_p0  ;;  %s2011_s27 = smul.u32 192, %s284_s2 }
  0x3f   : > { %s3086_s30 = scalar_select %p2707_p6, 1, 0 }
  0x40   : > { %s3088_s12 = scalar_select %p2712_p9, 1, 0 }
  0x41   : > { %3087 = sst [smem:[#allocation30_spill]] %s3086_s30  ;;  %p3090_p4 = scmp.lt.s32.totalorder %s2459_s16, 8 }
  0x42   : > { %3089 = sst [smem:[#allocation31_spill]] %s3088_s12  ;;  %s2012_s19 = smul.u32 192, %s2451_s14 }
  0x43   : > { %p2023_p5 = pnand %p3090_p4, %p2678_p3  ;;  %s288_s18 = scalar_lea.vmem [#allocation4], %s2011_s27 }
  0x44   : > { %s293_s6 = scalar_lea.hbm %s3027_s1, %s2012_s19  ;;  %s296_s5 = sshll.u32 %s288_s18, 4  ;;  %s297_s5 = int_to_ptr.vmem [resolvable:$true] %s296_s5 }
  0x45   : > { %s294_s29 = sshll.u32 %s293_s6, 4  ;;  %s285_s9 = scalar_lea.sflag [#allocation5], %s284_s2  ;;  %s295_s29 = int_to_ptr.hbm [resolvable:$true] %s294_s29 }
  0x46   : > { %s2464_s22 = smov 192   ;;  %s2465_s26 = smov 12  }
  0x47   : > { %2025 = dma.hbm_to_vmem [thread:$0]  (!%p2023_p5), %s295_s29, 3072, %s297_s5, %s285_s9, %s2464_s22, %s2464_s22, %s2465_s26  }
  0x48   : > { %s1659_s12 = sshll.u32 %s2447_s13, 5  ;;  %s3091_s10 = sshll.u32 %s2451_s14, 6 }
  0x49   : > { %s347_s24 = sadd.s32 %s1659_s12, %s3091_s10  ;;  %s342_s16 = scalar_lea.vmem [#allocation9], %s2636_s0 }
  0x4a   : > { %s352_s30 = sshll.u32 %s342_s16, 4  ;;  %s1661_s25 = sshll.u32 %s347_s24, 2  ;;  %s353_s30 = int_to_ptr.vmem [resolvable:$true] %s352_s30 }
  0x4b   : > { %s349_s18 = scalar_lea.hbm %s3030_s4, %s1661_s25  ;;  %s2466_s19 = smov 64  }
  0x4c   : > { %s350_s27 = sshll.u32 %s349_s18, 4  ;;  %s2467_s6 = smov 4   ;;  %s351_s27 = int_to_ptr.hbm [resolvable:$true] %s350_s27 }
  0x4d   : > { %2031 = dma.hbm_to_vmem [thread:$0]  (!%p2650_p10), %s351_s27, 2048, %s353_s30, %s2654_s11, %s2466_s19, %s2466_s19, %s2467_s6  }
  0x4e   : > { %383 = sbr.rel (%p2661_p13) target bundleno = 2125 (0x84d), region = 48  ;;  %s385_s5 = sand.u32 (!%p2661_p13), 1, %s2427_s8  }
  0x4f   : > { %s2013_s0 = smul.u32 (!%p2661_p13), 192, %s385_s5  ;;  %s386_s26 = scalar_lea.sflag (!%p2661_p13), [#allocation5], %s385_s5 }
  0x51   : > { %s2737_s24 = scalar_lea.vmem (!%p2661_p13), [#allocation4], %s2013_s0 }
  0x53   : > { %2386 = dma.done.wait (%p2691_p8), %s386_s26, 3072  }
  0x54   : > { %2388 = vsyncadd (%p2691_p8), %s386_s26, 4294964224  ;;  %s395_s25 = sand.u32 1, %s2666_s7   ;;  %s397_s29 = sand.u32 1, %s2415_s28  }
  0x55   : > { %s1663_s9 = sshll.u32 %s397_s29, 7  ;;  %s396_s15 = scalar_lea.sflag [#allocation8], %s395_s25 }
  0x56   : > { %s2745_s16 = scalar_lea.vmem [#allocation7], %s1663_s9 }
  0x57   : > { %2390 = dma.done.wait (%p2698_p11), %s396_s15, 4096  }
  0x58   : > { %2392 = vsyncadd (%p2698_p11), %s396_s15, 4294963200  ;;  %s3092_s11 = sld [smem:[#allocation15_spill]] }
  0x59   : > { %s3093_s20 = sld [smem:[#allocation21_spill]] }
  0x5a   : > { %s3094_s22 = sld [smem:[#allocation20_spill]] }
  0x5b   : > { %s3095_s23 = sld [smem:[#allocation19_spill]] }
  0x5c   : > { %s3096_s17 = sld [smem:[#allocation32_spill]] }
  0x5d   : > { %s3097_s5 = sld [smem:[#allocation33_spill]] }
  0x5e   : > { %s3055_s30 = sand.u32 1, %s3092_s11   ;;  %s3098_s11 = sld [smem:[#allocation36_spill]] }
  0x5f   : > { %s1665_s7 = sshll.u32 %s3055_s30, 3  ;;  %p472_p10 = scmp.lt.s32.totalorder %s3093_s20, 1 }
  0x60   : > { %p476_p13 = scmp.lt.s32.totalorder %s3094_s22, 1  ;;  %p497_p7 = scmp.eq.s32.totalorder %s3094_s22, 0 }
  0x61   : > { %s3144_s20 = smov (!%p472_p10, %s3093_s20), 1  ;;  %s1669_s10 = sshll.u32 %s3095_s23, 1 }
  0x62   : > { %s477_s2 = scalar_select %p476_p13, %s3094_s22, 1 }
  0x63   : > { %s1666_s12 = sshll.u32 %s3144_s20, 3  ;;  %p486_p3 = scmp.lt.s32.totalorder %s1669_s10, 3 }
  0x64   : > { %s475_s18 = scalar_lea.vmem %s3096_s17, %s1666_s12  ;;  %s1946_s27 = sshll.u32 %s477_s2, 6 }
  0x65   : > { %s2765_s0 = scalar_lea.vmem %s3097_s5, %s1946_s27  ;;  %s1670_s26 = sshll.u32 %s477_s2, 2 }
  0x66   : > { %s1671_s25 = sshll.u32 %s477_s2, 3  ;;  %s3146_s10 = smov (!%p486_p3, %s1669_s10), 3 }
  0x67   : > { %s495_s30 = scalar_lea.vmem %s3098_s11, %s1671_s25  ;;  %s2771_s20 = sadd.s32 %s1670_s26, %s3146_s10 }
  0x68   : > { %p498_p8 = scmp.eq.s32.totalorder %s3095_s23, 0  ;;  %s3099_s3 = sld [smem:[#allocation35_spill]] }
  0x69   : > { %s2778_s27 = scalar_lea.vmem [#allocation9], %s1663_s9  ;;  %s2780_s19 = scalar_lea.vmem [#allocation10], %s1665_s7 }
  0x6a   : > { %p499_p11 = pnand %p498_p8, %p497_p7 }
  0x6c   : > { %502 = sbr.rel (%p499_p11) target bundleno = 115 (0x73), region = 64 }
  0x6e   : > { %s490_s17 = scalar_lea.vmem %s3099_s3, %s2771_s20 }
  0x71   : > { %v503_v0 = vld [vmem:[%s475_s18] sm:$0xff] }
  0x72   : > { %504 = vst [vmem:[%s2780_s19] sm:$0xff] %v503_v0 }
  0x73 PF: > { %v2783_v1 = vld [vmem:[%s495_s30] sm:$0xff]  ;;  %s3100_s22 = sld [smem:[#allocation19_spill]] }
  0x79   : > { %p1672_p1 = scmp.ne.s32.totalorder %s3100_s22, 0 }
  0x7a   : > { %s2469_s9 = smov (!%p1672_p1), 96   ;;  %s2470_s23 = smov (!%p1672_p1), 64  }
  0x7b   : > { %508 = sbr.rel (%p1672_p1) target bundleno = 1521 (0x5f1), region = 68 }
  0x80   : > { %v1759_v2 = vld [vmem:[%s2737_s24 + $0xa8] sm:$0xf]  ;;  %v1969_v3 = vld [vmem:[%s2737_s24 + $0xb0] sm:$0xf0]  ;;  %v1968_v4 = vld [vmem:[%s2737_s24 + $0xac] sm:$0xf] }
  0x81   : > { %v1760_v5 = vor.u32 %v1969_v3, %v1759_v2  ;;  %v1761_v6 = vld [vmem:[%s2737_s24 + $0xb4] sm:$0xf0]  ;;  %v1747_v7 = vld [vmem:[%s2737_s24 + $0x90] sm:$0xf]  ;;  %v1966_v8 = vld [vmem:[%s2737_s24 + $0x98] sm:$0xf0] }
  0x82   : > { %v1764_v9 = vor.u32 %v1968_v4, %v1761_v6  ;;  %v1965_v10 = vld [vmem:[%s2737_s24 + $0x94] sm:$0xf]  ;;  %v1749_v11 = vld [vmem:[%s2737_s24 + $0x9c] sm:$0xf0]  ;;  %v1748_v12 = vor.u32 %v1966_v8, %v1747_v7  ;;  %v1735_v14 = vld [vmem:[%s2737_s24 + $0x78] sm:$0xf] }
  0x83   : > { %671 = vmatpush.bf16.msra.mxu0 %v1760_v5  ;;  %v1752_v13 = vor.u32 %v1965_v10, %v1749_v11  ;;  %v1963_v15 = vld [vmem:[%s2737_s24 + $0x80] sm:$0xf0]  ;;  %v1962_v16 = vld [vmem:[%s2737_s24 + $0x7c] sm:$0xf]  ;;  %v1737_v17 = vld [vmem:[%s2737_s24 + $0x84] sm:$0xf0] }
  0x84   : > { %684 = vmatpush.bf16.msra.mxu1 %v1764_v9  ;;  %v1736_v18 = vor.u32 %v1963_v15, %v1735_v14  ;;  %v1740_v19 = vor.u32 %v1962_v16, %v1737_v17  ;;  %v1723_v20 = vld [vmem:[%s2737_s24 + $0x60] sm:$0xf]  ;;  %v1960_v21 = vld [vmem:[%s2737_s24 + $0x68] sm:$0xf0]  ;;  %v1959_v22 = vld [vmem:[%s2737_s24 + $0x64] sm:$0xf] }
  0x85   : > { %v1725_v23 = vld [vmem:[%s2737_s24 + $0x6c] sm:$0xf0]  ;;  %v1724_v24 = vor.u32 %v1960_v21, %v1723_v20  ;;  %v1970_v26 = vld [vmem:[%s2737_s24 + $0xb8] sm:$0xf0]  ;;  %v1755_v27 = vld [vmem:[%s2737_s24 + $0x98] sm:$0xf] }
  0x86   : > { %v1767_v25 = vld [vmem:[%s2737_s24 + $0xb0] sm:$0xf]  ;;  %v1728_v28 = vor.u32 %v1959_v22, %v1725_v23  ;;  %v1711_v29 = vld [vmem:[%s2737_s24 + $0x48] sm:$0xf]  ;;  %v1957_v30 = vld [vmem:[%s2737_s24 + $0x50] sm:$0xf0] }
  0x87   : > { %672 = vmatpush.bf16.msra.mxu0 %v1748_v12  ;;  %v1768_v31 = vor.u32 %v1970_v26, %v1767_v25  ;;  %v1967_v32 = vld [vmem:[%s2737_s24 + $0xa0] sm:$0xf0]  ;;  %v1956_v33 = vld [vmem:[%s2737_s24 + $0x4c] sm:$0xf]  ;;  %v1713_v34 = vld [vmem:[%s2737_s24 + $0x54] sm:$0xf0]  ;;  %v1712_v36 = vor.u32 %v1957_v30, %v1711_v29 }
  0x88   : > { %685 = vmatpush.bf16.msra.mxu1 %v1752_v13  ;;  %v1756_v35 = vor.u32 %v1967_v32, %v1755_v27  ;;  %v1743_v37 = vld [vmem:[%s2737_s24 + $0x80] sm:$0xf]  ;;  %v1964_v38 = vld [vmem:[%s2737_s24 + $0x88] sm:$0xf0]  ;;  %v1716_v39 = vor.u32 %v1956_v33, %v1713_v34  ;;  %v1699_v40 = vld [vmem:[%s2737_s24 + $0x30] sm:$0xf] }
  0x89   : > { %697 = vmatpush.bf16.msra.mxu2 %v1768_v31  ;;  %v1954_v41 = vld [vmem:[%s2737_s24 + $0x38] sm:$0xf0]  ;;  %v1953_v42 = vld [vmem:[%s2737_s24 + $0x34] sm:$0xf]  ;;  %v1701_v43 = vld [vmem:[%s2737_s24 + $0x3c] sm:$0xf0]  ;;  %v1744_v44 = vor.u32 %v1964_v38, %v1743_v37 }
  0x8a   : > { %v1700_v45 = vor.u32 %v1954_v41, %v1699_v40  ;;  %v1731_v46 = vld [vmem:[%s2737_s24 + $0x68] sm:$0xf]  ;;  %v1961_v47 = vld [vmem:[%s2737_s24 + $0x70] sm:$0xf0]  ;;  %v1704_v48 = vor.u32 %v1953_v42, %v1701_v43  ;;  %v1687_v49 = vld [vmem:[%s2737_s24 + $0x18] sm:$0xf] }
  0x8b   : > { %673 = vmatpush.bf16.msra.mxu0 %v1736_v18  ;;  %v1951_v50 = vld [vmem:[%s2737_s24 + $0x20] sm:$0xf0]  ;;  %v1950_v51 = vld [vmem:[%s2737_s24 + $0x1c] sm:$0xf]  ;;  %v1689_v52 = vld [vmem:[%s2737_s24 + $0x24] sm:$0xf0]  ;;  %v1732_v53 = vor.u32 %v1961_v47, %v1731_v46 }
  0x8c   : > { %686 = vmatpush.bf16.msra.mxu1 %v1740_v19  ;;  %v1688_v54 = vor.u32 %v1951_v50, %v1687_v49  ;;  %v1719_v55 = vld [vmem:[%s2737_s24 + $0x50] sm:$0xf]  ;;  %v1958_v56 = vld [vmem:[%s2737_s24 + $0x58] sm:$0xf0]  ;;  %v1692_v57 = vor.u32 %v1950_v51, %v1689_v52  ;;  %v1675_v58 = vld [vmem:[%s2737_s24] sm:$0xf] }
  0x8d   : > { %698 = vmatpush.bf16.msra.mxu2 %v1756_v35  ;;  %v1948_v59 = vld [vmem:[%s2737_s24 + $0x8] sm:$0xf0]  ;;  %v1947_v60 = vld [vmem:[%s2737_s24 + $0x4] sm:$0xf]  ;;  %v1677_v61 = vld [vmem:[%s2737_s24 + $0xc] sm:$0xf0]  ;;  %v1720_v62 = vor.u32 %v1958_v56, %v1719_v55 }
  0x8e   : > { %v1676_v63 = vor.u32 %v1948_v59, %v1675_v58  ;;  %v2829_v0 = vld [vmem:[%s2780_s19] sm:$0xff]  ;;  %v1707_v2 = vld [vmem:[%s2737_s24 + $0x38] sm:$0xf]  ;;  %v1680_v4 = vor.u32 %v1947_v60, %v1677_v61  ;;  %v1949_v11 = vld [vmem:[%s2737_s24 + $0x10] sm:$0xf0]  ;;  %vm730_vm0 = vcmask 261120  }
  0x8f   : > { %674 = vmatpush.bf16.msra.mxu0 %v1724_v24  ;;  %v1955_v3 = vld [vmem:[%s2737_s24 + $0x40] sm:$0xf0]  ;;  %v510_v5 = vpack.c.bf16 %v2829_v0, %v2829_v0  ;;  %v1695_v7 = vld [vmem:[%s2737_s24 + $0x20] sm:$0xf]  ;;  %v1952_v8 = vld [vmem:[%s2737_s24 + $0x28] sm:$0xf0] }
  0x90   : > { %687 = vmatpush.bf16.msra.mxu1 %v1728_v28  ;;  %v1708_v6 = vor.u32 %v1955_v3, %v1707_v2  ;;  %v1696_v9 = vor.u32 %v1952_v8, %v1695_v7  ;;  %v1683_v10 = vld [vmem:[%s2737_s24 + $0x8] sm:$0xf]  ;;  %v1972_v13 = vld [vmem:[%s2765_s0 + $0x8] sm:$0xff]  ;;  %s2468_s24 = smov 32   ;;  %v1971_v26 = vld [vmem:[%s2765_s0] sm:$0xff]  ;;  %vm764_vm1 = vcmask 1043456  }
  0x91   : > { %699 = vmatpush.bf16.msra.mxu2 %v1744_v44  ;;  %v1684_v12 = vor.u32 %v1949_v11, %v1683_v10  ;;  %vm750_vm2 = vcmask 64512  }
  0x93   : > { %675 = vmatpush.bf16.msra.mxu0 %v1712_v36 }
  0x94   : > { %688 = vmatpush.bf16.msra.mxu1 %v1716_v39 }
  0x95   : > { %700 = vmatpush.bf16.msra.mxu2 %v1732_v53 }
  0x97   : > { %676 = vmatpush.bf16.msra.mxu0 %v1700_v45 }
  0x98   : > { %689 = vmatpush.bf16.msra.mxu1 %v1704_v48 }
  0x99   : > { %701 = vmatpush.bf16.msra.mxu2 %v1720_v62 }
  0x9b   : > { %677 = vmatpush.bf16.msra.mxu0 %v1688_v54 }
  0x9c   : > { %690 = vmatpush.bf16.msra.mxu1 %v1692_v57 }
  0x9d   : > { %702 = vmatpush.bf16.msra.mxu2 %v1708_v6 }
  0x9f   : > { %678 = vmatpush.bf16.msra.mxu0 %v1676_v63 }
  0xa0   : > { %691 = vmatpush.bf16.msra.mxu1 %v1680_v4 }
  0xa1   : > { %703 = vmatpush.bf16.msra.mxu2 %v1696_v9 }
  0xa2   : > { %679 = vmatmul.bf16.vlgmr.msra.gmra.mxu0 %v510_v5 }
  0xa3   : > { %692 = vmatmul.bf16.vlgmr.msra.gmra.mxu1 %v510_v5 }
  0xa5   : > { %704 = vmatpush.bf16.msra.mxu2 %v1684_v12 }
  0xa8   : > { %705 = vmatmul.bf16.vlgmr.msra.gmra.mxu2 %v510_v5 }
  0xa9   : > { %899 = vmatpush.bf16.msrb.mxu2 %v1972_v13 }
  0xad   : > { %900 = vmatpush.bf16.msrb.mxu2 %v1971_v26 }
 0x11f   : > { %v680_v14 = vpop.f32.mrf.mxu0 }
 0x120   : > { %v710_v15 = vmul.f32 0.088388346, %v680_v14  ;;  %v693_v16 = vpop.f32.mrf.mxu1 }
 0x121   : > { %v728_v17 = vpack.c.bf16 %v693_v16, %v693_v16 }
 0x122   : > { %v727_v18 = vpack.c.bf16 %v710_v15, %v710_v15 }
 0x123   : > { %v790_v19 = vunpack.c.l.b16 %v728_v17  ;;  %v735_v20 = vsel %vm730_vm0, %v728_v17, 0 }
 0x124   : > { %744 = vmatpush.bf16.xpose.msra.mxu3 %v735_v20  ;;  %v785_v22 = vunpack.c.l.b16 %v727_v18 }
 0x125   : > { %v791_v21 = vpack.c.b16 %v790_v19, %v790_v19 }
 0x126   : > { %v786_v25 = vpack.c.b16 %v785_v22, %v785_v22  ;;  %v1973_v22 = vld [vmem:[%s2765_s0 + $0x10] sm:$0xff] }
 0x127   : > { %994 = vrot.lane.b32.xlu2 %v791_v21, %s2468_s24  ;;  %792 = vrot.lane.b32.xlu1 %v791_v21, %s2469_s9  ;;  %v682_v23 = vpop.f32.mrf.mxu0 }
 0x128   : > { %v695_v24 = vpop.f32.mrf.mxu1 }
 0x12b   : > { %1769 = vmatmul.msk.bf16.vlgmr.msra.gmra.mxu3 %vm730_vm0, %v727_v18  ;;  %v706_v27 = vpop.f32.mrf.mxu2 }
 0x12c   : > { %v729_v28 = vpack.c.bf16 %v706_v27, %v706_v27 }
 0x12e   : > { %v824_v29 = vunpack.c.l.b16 %v729_v28  ;;  %v766_v32 = vsel %vm764_vm1, %v729_v28, 0 }
 0x12f   : > { %908 = vrot.lane.b32.xlu2 %v791_v21, %s2470_s23  ;;  %787 = vrot.lane.b32.xlu1 %v786_v25, %s2469_s9  ;;  %v1974_v21 = vld [vmem:[%s2765_s0 + $0x18] sm:$0xff] }
 0x130   : > { %v2846_v30 = vpack.c.b16 %v824_v29, %v824_v29  ;;  %775 = vmatpush.bf16.msrb.mxu3 %v766_v32  ;;  %871 = vmatpush.bf16.msrb.mxu1 %v1974_v21 }
 0x133   : > { %v708_v31 = vpop.f32.mrf.mxu2 }
 0x134   : > { %872 = vmatpush.bf16.msrb.mxu1 %v1973_v22 }
 0x137   : > { %906 = vrot.lane.b32.xlu1 %v786_v25, %s2470_s23 }
 0x13f   : > { %826 = vrot.lane.b32.xlu1 %v2846_v30, %s2469_s9 }
 0x181   : > { %v995_v33 = vpop.permute.xlu2 %994 }
 0x182   : > { %v1000_v34 = vsel %vm730_vm0, %v995_v33, 0 }
 0x183   : > { %1009 = vmatpush.bf16.xpose.msra.mxu2 %v1000_v34 }
 0x189   : > { %v909_v44 = vpop.permute.xlu2 %908 }
 0x18a   : > { %v914_v47 = vsel %vm730_vm0, %v909_v44, 0 }
 0x199   : > { %v793_v35 = vpop.permute.xlu1 %792 }
 0x19a   : > { %v798_v36 = vsel %vm730_vm0, %v793_v35, 0 }
 0x19b   : > { %807 = vmatpush.bf16.xpose.msra.mxu3 %v798_v36 }
 0x1a1   : > { %v788_v48 = vpop.permute.xlu1 %787 }
 0x1a9   : > { %v907_v49 = vpop.permute.xlu1 %906 }
 0x1ae   : > { %v746_v37 = vpop.f32.mrf.mxu3 }
 0x1af   : > { %v751_v38 = vsel %vm750_vm2, %v746_v37, -inf }
 0x1b0   : > { %752 = vmax.xlane.f32.xlu0 %v751_v38  ;;  %v1978_v38 = vld [vmem:[%s2765_s0 + $0x38] sm:$0xff] }
 0x1b1   : > { %v827_v50 = vpop.permute.xlu1 %826 }
 0x1b2   : > { %v832_v51 = vsel %vm764_vm1, %v827_v50, 0 }
 0x1b3   : > { %841 = vmatpush.bf16.msrb.mxu0 %v832_v51 }
 0x1b6   : > { %v748_v39 = vpop.f32.mrf.mxu3 }
 0x1b7   : > { %v1977_v39 = vld [vmem:[%s2765_s0 + $0x30] sm:$0xff] }
 0x223   : > { %v753_v40 = vpop.xlane.xlu0 %752 }
 0x224   : > { %v754_v41 = vsub.f32 %v746_v37, %v753_v40  ;;  %v1976_v40 = vld [vmem:[%s2765_s0 + $0x28] sm:$0xff] }
 0x225   : > { %984 = vmatpush.bf16.msra.mxu1 %v1976_v40 }
 0x226   : > { %v755_v42 = vmul.f32 1.442695, %v754_v41  ;;  %v1975_v41 = vld [vmem:[%s2765_s0 + $0x20] sm:$0xff] }
 0x228   : > { %2179 = vpow2.f32 %v755_v42 }
 0x229   : > { %985 = vmatpush.bf16.msra.mxu1 %v1975_v41 }
 0x22e   : > { %v2180_v43 = vpop.eup %2179 }
 0x22f   : > { %v757_v45 = vsel %vm750_vm2, %v2180_v43, 0.0  ;;  %v760_v46 = vpack.c.bf16 %v2180_v43, %v2180_v43 }
 0x230   : > { %758 = vadd.xlane.f32.xlu0 %v757_v45 }
 0x231   : > { %1770 = vmatmul.msk.bf16.vlgmr.msrb.gmra.mxu3 %vm750_vm2, %v760_v46 }
 0x232   : > { %923 = vmatpush.bf16.xpose.msrb.mxu3 %v914_v47 }
 0x241   : > { %1771 = vmatmul.msk.bf16.vlgmr.msra.gmra.mxu3 %vm730_vm0, %v788_v48 }
 0x244   : > { %992 = vrot.lane.b32.xlu0 %v786_v25, %s2468_s24 }
 0x251   : > { %1791 = vmatmul.msk.bf16.vlgmr.msrb.gmra.mxu3 %vm730_vm0, %v907_v49 }
 0x2a3   : > { %v759_v52 = vpop.xlane.xlu0 %758 }
 0x2a4   : > { %2181 = vrcp.f32 %v759_v52 }
 0x2aa   : > { %v2182_v53 = vpop.eup %2181 }
 0x2b4   : > { %v777_v54 = vpop.f32.mrf.mxu3 }
 0x2b5   : > { %v782_v55 = vmul.f32 %v2182_v53, %v777_v54 }
 0x2b6   : > { %v993_v60 = vpop.permute.xlu0 %992 }
 0x2b7   : > { %v783_v56 = vpack.c.bf16 %v782_v55, %v782_v55 }
 0x2b9   : > { %1790 = vmatmul.msk.bf16.vlgmr.msrb.gmra.mxu2 %vm730_vm0, %v783_v56 }
 0x2bc   : > { %v779_v57 = vpop.f32.mrf.mxu3 }
 0x2c4   : > { %v809_v58 = vpop.f32.mrf.mxu3 }
 0x2c5   : > { %v813_v59 = vsel %vm750_vm2, %v809_v58, -inf }
 0x2c6   : > { %814 = vmax.xlane.f32.xlu2 %v813_v59 }
 0x2c9   : > { %1802 = vmatmul.msk.bf16.vlgmr.msra.gmra.mxu2 %vm730_vm0, %v993_v60 }
 0x2cc   : > { %v811_v61 = vpop.f32.mrf.mxu3 }
 0x2cd   : > { %v1078_v61 = vperm.slane %v2783_v1, 0 }
 0x2d4   : > { %v925_v62 = vpop.f32.mrf.mxu3 }
 0x2d5   : > { %v929_v63 = vsel %vm750_vm2, %v925_v62, -inf }
 0x2d6   : > { %930 = vmax.xlane.f32.xlu0 %v929_v63 }
 0x2dc   : > { %v927_v2 = vpop.f32.mrf.mxu3 }
 0x2de   : > { %1025 = vrot.lane.b32.xlu2 %v2846_v30, %s2468_s24 }
 0x339   : > { %v815_v3 = vpop.xlane.xlu2 %814 }
 0x33a   : > { %v816_v4 = vsub.f32 %v809_v58, %v815_v3 }
 0x33c   : > { %v817_v5 = vmul.f32 1.442695, %v816_v4  ;;  %v2866_v6 = vpop.f32.mrf.mxu2  ;;  %v2471_v4 = vmov 128.0  }
 0x33e   : > { %2183 = vpow2.f32 %v817_v5 }
 0x341   : > { %v1026_v7 = vpop.permute.xlu2 %1025 }
 0x342   : > { %v1031_v8 = vsel %vm764_vm1, %v1026_v7, 0 }
 0x343   : > { %1040 = vmatpush.bf16.msra.mxu3 %v1031_v8 }
 0x344   : > { %v2184_v9 = vpop.eup %2183  ;;  %v904_v10 = vpop.f32.mrf.mxu2 }
 0x345   : > { %v819_v11 = vsel %vm750_vm2, %v2184_v9, 0.0  ;;  %v822_v12 = vpack.c.bf16 %v2184_v9, %v2184_v9 }
 0x346   : > { %820 = vadd.xlane.f32.xlu0 %v819_v11 }
 0x347   : > { %1772 = vmatmul.msk.bf16.vlgmr.msrb.gmra.mxu0 %vm750_vm2, %v822_v12 }
 0x349   : > { %v931_v13 = vpop.xlane.xlu0 %930 }
 0x34a   : > { %v932_v14 = vsub.f32 %v925_v62, %v931_v13 }
 0x34c   : > { %v933_v15 = vmul.f32 1.442695, %v932_v14  ;;  %v1011_v16 = vpop.f32.mrf.mxu2 }
 0x34d   : > { %v1015_v17 = vsel %vm750_vm2, %v1011_v16, -inf }
 0x34e   : > { %2185 = vpow2.f32 %v933_v15  ;;  %1016 = vmax.xlane.f32.xlu1 %v1015_v17  ;;  %v2472_v15 = vmov 0.0  }
 0x34f   : > { %1113 = vst [vmem:[#allocation3] sm:$0xff] %v2472_v15 }
 0x354   : > { %v2186_v18 = vpop.eup %2185  ;;  %v1013_v19 = vpop.f32.mrf.mxu2 }
 0x355   : > { %v935_v20 = vsel %vm750_vm2, %v2186_v18, 0.0  ;;  %v938_v37 = vpack.c.bf16 %v2186_v18, %v2186_v18 }
 0x356   : > { %936 = vadd.xlane.f32.xlu2 %v935_v20 }
 0x367   : > { %939 = vrot.lane.b32.xlu1 %v2846_v30, %s2470_s23 }
 0x3b9   : > { %v821_v23 = vpop.xlane.xlu0 %820 }
 0x3ba   : > { %2187 = vrcp.f32 %v821_v23 }
 0x3c0   : > { %v2188_v26 = vpop.eup %2187 }
 0x3c1   : > { %v1017_v24 = vpop.xlane.xlu1 %1016 }
 0x3c2   : > { %v1018_v25 = vsub.f32 %v1011_v16, %v1017_v24  ;;  %v1108_v24 = vperm.slane %v2783_v1, 1 }
 0x3c4   : > { %v1019_v27 = vmul.f32 1.442695, %v1018_v25  ;;  %v843_v28 = vpop.f32.mrf.mxu0 }
 0x3c5   : > { %v848_v29 = vmul.f32 %v2188_v26, %v843_v28  ;;  %v1110_v26 = vperm.slane %v2783_v1, 2 }
 0x3c6   : > { %2189 = vpow2.f32 %v1019_v27 }
 0x3c7   : > { %v849_v31 = vpack.c.bf16 %v848_v29, %v848_v29 }
 0x3c9   : > { %1781 = vmatmul.msk.bf16.vlgmr.msrb.gmra.mxu1 %vm730_vm0, %v849_v31  ;;  %v937_v46 = vpop.xlane.xlu2 %936 }
 0x3cc   : > { %v2190_v30 = vpop.eup %2189  ;;  %v845_v32 = vpop.f32.mrf.mxu0 }
 0x3cd   : > { %v1024_v33 = vpack.c.bf16 %v2190_v30, %v2190_v30  ;;  %v1021_v34 = vsel %vm750_vm2, %v2190_v30, 0.0 }
 0x3ce   : > { %1022 = vadd.xlane.f32.xlu0 %v1021_v34 }
 0x3cf   : > { %1803 = vmatmul.msk.bf16.vlgmr.msra.gmra.mxu3 %vm750_vm2, %v1024_v33 }
 0x3d9   : > { %v940_v35 = vpop.permute.xlu1 %939 }
 0x3da   : > { %v945_v36 = vsel %vm764_vm1, %v940_v35, 0 }
 0x3db   : > { %954 = vmatpush.bf16.msra.mxu0 %v945_v36 }
 0x3de   : > { %1792 = vmatmul.msk.bf16.vlgmr.msra.gmra.mxu0 %vm750_vm2, %v938_v37 }
 0x3df   : > { %1070 = vmatpush.bf16.msrb.mxu0 %v1978_v38 }
 0x3e3   : > { %1071 = vmatpush.bf16.msrb.mxu0 %v1977_v39 }
 0x441   : > { %v1023_v43 = vpop.xlane.xlu0 %1022 }
 0x442   : > { %2191 = vrcp.f32 %v1023_v43 }
 0x443   : > { %2193 = vrcp.f32 %v937_v46 }
 0x444   : > { %2195 = vrcp.f32 %v2471_v4 }
 0x446   : > { %v874_v42 = vpop.f32.mrf.mxu1 }
 0x447   : > { %v903_v57 = vadd.f32 %v2866_v6, %v874_v42 }
 0x448   : > { %v2192_v45 = vpop.eup %2191 }
 0x449   : > { %v2194_v51 = vpop.eup %2193 }
 0x44a   : > { %v2196_v5 = vpop.eup %2195 }
 0x44b   : > { %v1084_v7 = vmul.f32 128.0, %v2196_v5  ;;  %vm1088_vm3 = vweird.f32 %v2196_v5 }
 0x44d   : > { %v1085_v8 = vsub.f32 1.0, %v1084_v7 }
 0x44e   : > { %v876_v44 = vpop.f32.mrf.mxu1 }
 0x44f   : > { %v1086_v9 = vmul.f32 %v2196_v5, %v1085_v8 }
 0x451   : > { %v1087_v10 = vadd.f32 %v2196_v5, %v1086_v9 }
 0x452   : > { %v1042_v47 = vpop.f32.mrf.mxu3 }
 0x453   : > { %v1047_v48 = vmul.f32 %v2192_v45, %v1042_v47  ;;  %v1089_v6 = vsel %vm1088_vm3, %v2196_v5, %v1087_v10 }
 0x455   : > { %v1048_v49 = vpack.c.bf16 %v1047_v48, %v1047_v48 }
 0x457   : > { %1812 = vmatmul.msk.bf16.vlgmr.msrb.gmra.mxu0 %vm730_vm0, %v1048_v49 }
 0x45a   : > { %v1044_v50 = vpop.f32.mrf.mxu3 }
 0x45b   : > { %v956_v52 = vpop.f32.mrf.mxu0 }
 0x45c   : > { %v961_v53 = vmul.f32 %v2194_v51, %v956_v52 }
 0x45e   : > { %v962_v54 = vpack.c.bf16 %v961_v53, %v961_v53 }
 0x460   : > { %1801 = vmatmul.msk.bf16.vlgmr.msra.gmra.mxu1 %vm730_vm0, %v962_v54 }
 0x463   : > { %v958_v55 = vpop.f32.mrf.mxu0 }
 0x4d4   : > { %v1073_v56 = vpop.f32.mrf.mxu0 }
 0x4dc   : > { %v1075_v58 = vpop.f32.mrf.mxu0 }
 0x4dd   : > { %v987_v59 = vpop.f32.mrf.mxu1 }
 0x4de   : > { %v991_v60 = vadd.f32 %v987_v59, %v903_v57 }
 0x4e0   : > { %v1077_v62 = vadd.f32 %v1073_v56, %v991_v60 }
 0x4e2   : > { %v1079_v63 = vadd.f32 %v1078_v61, %v1077_v62 }
 0x4e4   : > { %v1080_v2 = vadd.f32 %v1079_v63, %v2829_v0 }
 0x4e5   : > { %v989_v3 = vpop.f32.mrf.mxu1 }
 0x4e6   : > { %1081 = vadd.xlane.f32.xlu0 %v1080_v2 }
 0x559   : > { %v1082_v11 = vpop.xlane.xlu0 %1081 }
 0x55a   : > { %v1090_v12 = vmul.f32 %v1089_v6, %v1082_v11 }
 0x55c   : > { %v1091_v13 = vsub.f32 %v1080_v2, %v1090_v12 }
 0x55e   : > { %v1092_v14 = vmul.f32 %v1091_v13, %v1091_v13 }
 0x560   : > { %1093 = vadd.xlane.f32.xlu1 %v1092_v14 }
 0x5d3   : > { %v1094_v16 = vpop.xlane.xlu1 %1093 }
 0x5d4   : > { %v1095_v0 = vmul.f32 %v1094_v16, %v1089_v6 }
 0x5d6   : > { %v1096_v17 = vadd.f32 1e-05, %v1095_v0 }
 0x5d8   : > { %2197 = vrsqrt.f32 %v1096_v17  ;;  %vm1103_vm5 = vweird.f32 %v1096_v17 }
 0x5de   : > { %v2198_v18 = vpop.eup %2197 }
 0x5df   : > { %v1098_v19 = vmul.f32 %v2198_v18, %v1096_v17  ;;  %vm1104_vm4 = vweird.f32 %v2198_v18 }
 0x5e0   : > { %vm1105_vm6 = vmor %vm1103_vm5, %vm1104_vm4 }
 0x5e1   : > { %v1099_v20 = vmul.f32 %v2198_v18, %v1098_v19 }
 0x5e3   : > { %v1100_v21 = vmul.f32 0.5, %v1099_v20 }
 0x5e5   : > { %v1101_v22 = vsub.f32 1.5, %v1100_v21 }
 0x5e7   : > { %v1102_v23 = vmul.f32 %v2198_v18, %v1101_v22 }
 0x5e9   : > { %v1106_v25 = vsel %vm1105_vm6, %v2198_v18, %v1102_v23 }
 0x5ea   : > { %v1107_v27 = vmul.f32 %v1106_v25, %v1091_v13 }
 0x5ec   : > { %v1109_v28 = vmul.f32 %v1108_v24, %v1107_v27 }
 0x5ee   : > { %v1111_v29 = vadd.f32 %v1110_v26, %v1109_v28 }
 0x5f0   : > { %1112 = vst [vmem:[#allocation2] sm:$0xff] %v1111_v29 }
 0x5f1 PF: > { %v1871_v31 = vld [vmem:[%s2745_s16 + $0x70] sm:$0xf]  ;;  %v1994_v30 = vld [vmem:[%s2745_s16 + $0x74] sm:$0xf0]  ;;  %v1993_v32 = vld [vmem:[%s2745_s16 + $0x74] sm:$0xf] }
 0x5f2   : > { %v1872_v33 = vor.u32 %v1994_v30, %v1871_v31  ;;  %v1873_v34 = vld [vmem:[%s2745_s16 + $0x78] sm:$0xf0]  ;;  %v1863_v35 = vld [vmem:[%s2745_s16 + $0x60] sm:$0xf]  ;;  %v1992_v36 = vld [vmem:[%s2745_s16 + $0x64] sm:$0xf0] }
 0x5f3   : > { %v1876_v37 = vor.u32 %v1993_v32, %v1873_v34  ;;  %v1991_v38 = vld [vmem:[%s2745_s16 + $0x64] sm:$0xf]  ;;  %v1865_v39 = vld [vmem:[%s2745_s16 + $0x68] sm:$0xf0]  ;;  %v1864_v40 = vor.u32 %v1992_v36, %v1863_v35  ;;  %v1855_v42 = vld [vmem:[%s2745_s16 + $0x50] sm:$0xf] }
 0x5f4   : > { %1218 = vmatpush.bf16.msra.mxu0 %v1872_v33  ;;  %v1868_v41 = vor.u32 %v1991_v38, %v1865_v39  ;;  %v1990_v43 = vld [vmem:[%s2745_s16 + $0x54] sm:$0xf0]  ;;  %v1989_v44 = vld [vmem:[%s2745_s16 + $0x54] sm:$0xf]  ;;  %v1857_v45 = vld [vmem:[%s2745_s16 + $0x58] sm:$0xf0] }
 0x5f5   : > { %1231 = vmatpush.bf16.msra.mxu1 %v1876_v37  ;;  %v1856_v46 = vor.u32 %v1990_v43, %v1855_v42  ;;  %v1860_v47 = vor.u32 %v1989_v44, %v1857_v45  ;;  %v1847_v48 = vld [vmem:[%s2745_s16 + $0x40] sm:$0xf]  ;;  %v1988_v49 = vld [vmem:[%s2745_s16 + $0x44] sm:$0xf0]  ;;  %v1987_v50 = vld [vmem:[%s2745_s16 + $0x44] sm:$0xf] }
 0x5f6   : > { %v1849_v51 = vld [vmem:[%s2745_s16 + $0x48] sm:$0xf0]  ;;  %v1848_v52 = vor.u32 %v1988_v49, %v1847_v48  ;;  %v2002_v53 = vld [vmem:[%s2778_s27 + $0x38] sm:$0xff]  ;;  %v1839_v56 = vld [vmem:[%s2745_s16 + $0x30] sm:$0xf]  ;;  %s3102_s2 = sld [smem:[#allocation19_spill]] }
 0x5f7   : > { %v2010_v54 = vld [vmem:[%s2778_s27 + $0x78] sm:$0xff]  ;;  %v1852_v55 = vor.u32 %v1987_v50, %v1849_v51  ;;  %v1985_v58 = vld [vmem:[%s2745_s16 + $0x34] sm:$0xf]  ;;  %1377 = vmatpush.bf16.msra.mxu2 %v2002_v53  ;;  %v1831_v2 = vld [vmem:[%s2745_s16 + $0x20] sm:$0xf] }
 0x5f8   : > { %1219 = vmatpush.bf16.msra.mxu0 %v1864_v40  ;;  %v1986_v57 = vld [vmem:[%s2745_s16 + $0x34] sm:$0xf0]  ;;  %v1841_v59 = vld [vmem:[%s2745_s16 + $0x38] sm:$0xf0]  ;;  %1390 = vmatpush.bf16.msra.mxu3 %v2010_v54  ;;  %v2001_v60 = vld [vmem:[%s2778_s27 + $0x30] sm:$0xff] }
 0x5f9   : > { %1232 = vmatpush.bf16.msra.mxu1 %v1868_v41  ;;  %v2009_v61 = vld [vmem:[%s2778_s27 + $0x70] sm:$0xff]  ;;  %v1840_v62 = vor.u32 %v1986_v57, %v1839_v56  ;;  %v1844_v63 = vor.u32 %v1985_v58, %v1841_v59  ;;  %v1984_v3 = vld [vmem:[%s2745_s16 + $0x24] sm:$0xf0]  ;;  %v1983_v4 = vld [vmem:[%s2745_s16 + $0x24] sm:$0xf] }
 0x5fa   : > { %v1833_v5 = vld [vmem:[%s2745_s16 + $0x28] sm:$0xf0]  ;;  %v1832_v9 = vor.u32 %v1984_v3, %v1831_v2  ;;  %v1823_v6 = vld [vmem:[%s2745_s16 + $0x10] sm:$0xf]  ;;  %v1982_v11 = vld [vmem:[%s2745_s16 + $0x14] sm:$0xf0] }
 0x5fb   : > { %1378 = vmatpush.bf16.msra.mxu2 %v2001_v60  ;;  %v2000_v7 = vld [vmem:[%s2778_s27 + $0x28] sm:$0xff]  ;;  %v1836_v10 = vor.u32 %v1983_v4, %v1833_v5  ;;  %v1981_v12 = vld [vmem:[%s2745_s16 + $0x14] sm:$0xf]  ;;  %v1825_v13 = vld [vmem:[%s2745_s16 + $0x18] sm:$0xf0]  ;;  %v1824_v16 = vor.u32 %v1982_v11, %v1823_v6 }
 0x5fc   : > { %1220 = vmatpush.bf16.msra.mxu0 %v1856_v46  ;;  %1391 = vmatpush.bf16.msra.mxu3 %v2009_v61  ;;  %v2008_v8 = vld [vmem:[%s2778_s27 + $0x68] sm:$0xff]  ;;  %v1999_v14 = vld [vmem:[%s2778_s27 + $0x20] sm:$0xff]  ;;  %v1828_v0 = vor.u32 %v1981_v12, %v1825_v13  ;;  %v1998_v21 = vld [vmem:[%s2778_s27 + $0x18] sm:$0xff]  ;;  %p1941_p12 = scmp.ne.s32.totalorder %s3102_s2, 1 }
 0x5fd   : > { %1233 = vmatpush.bf16.msra.mxu1 %v1860_v47  ;;  %v2007_v15 = vld [vmem:[%s2778_s27 + $0x60] sm:$0xff]  ;;  %v1980_v18 = vld [vmem:[%s2745_s16 + $0x4] sm:$0xf0]  ;;  %v1817_v20 = vld [vmem:[%s2745_s16 + $0x8] sm:$0xf0] }
 0x5fe   : > { %v1815_v17 = vld [vmem:[%s2745_s16] sm:$0xf]  ;;  %v1979_v19 = vld [vmem:[%s2745_s16 + $0x4] sm:$0xf]  ;;  %v2006_v22 = vld [vmem:[%s2778_s27 + $0x58] sm:$0xff] }
 0x5ff   : > { %1379 = vmatpush.bf16.msra.mxu2 %v2000_v7  ;;  %v1816_v23 = vor.u32 %v1980_v18, %v1815_v17  ;;  %v1114_v24 = vld [vmem:[#allocation2] sm:$0xff]  ;;  %v1820_v25 = vor.u32 %v1979_v19, %v1817_v20  ;;  %v1996_v29 = vld [vmem:[%s2778_s27 + $0x8] sm:$0xff]  ;;  %v1995_v30 = vld [vmem:[%s2778_s27] sm:$0xff] }
 0x600   : > { %1221 = vmatpush.bf16.msra.mxu0 %v1848_v52  ;;  %1392 = vmatpush.bf16.msra.mxu3 %v2008_v8  ;;  %v1997_v26 = vld [vmem:[%s2778_s27 + $0x10] sm:$0xff]  ;;  %v1115_v28 = vpack.c.bf16 %v1114_v24, %v1114_v24  ;;  %v2004_v31 = vld [vmem:[%s2778_s27 + $0x48] sm:$0xff]  ;;  %v2003_v32 = vld [vmem:[%s2778_s27 + $0x40] sm:$0xff] }
 0x601   : > { %1234 = vmatpush.bf16.msra.mxu1 %v1852_v55  ;;  %v2005_v27 = vld [vmem:[%s2778_s27 + $0x50] sm:$0xff]  ;;  %v1246_v47 = vld [vmem:[#allocation3] sm:$0xff] }
 0x602   : > { %v1132_v33 = vld [vmem:[%s490_s17] sm:$0x3] }
 0x603   : > { %1380 = vmatpush.bf16.msra.mxu2 %v1999_v14  ;;  %v1134_v34 = vperm.slane %v1132_v33, 0  ;;  %v1135_v35 = vperm.slane %v1132_v33, 1 }
 0x604   : > { %1222 = vmatpush.bf16.msra.mxu0 %v1840_v62  ;;  %1393 = vmatpush.bf16.msra.mxu3 %v2007_v15 }
 0x605   : > { %1235 = vmatpush.bf16.msra.mxu1 %v1844_v63 }
 0x607   : > { %1381 = vmatpush.bf16.msra.mxu2 %v1998_v21 }
 0x608   : > { %1223 = vmatpush.bf16.msra.mxu0 %v1832_v9  ;;  %1394 = vmatpush.bf16.msra.mxu3 %v2006_v22 }
 0x609   : > { %1236 = vmatpush.bf16.msra.mxu1 %v1836_v10 }
 0x60b   : > { %1382 = vmatpush.bf16.msra.mxu2 %v1997_v26 }
 0x60c   : > { %1224 = vmatpush.bf16.msra.mxu0 %v1824_v16  ;;  %1395 = vmatpush.bf16.msra.mxu3 %v2005_v27 }
 0x60d   : > { %1237 = vmatpush.bf16.msra.mxu1 %v1828_v0 }
 0x60f   : > { %1383 = vmatpush.bf16.msra.mxu2 %v1996_v29 }
 0x610   : > { %1225 = vmatpush.bf16.msra.mxu0 %v1816_v23  ;;  %1396 = vmatpush.bf16.msra.mxu3 %v2004_v31 }
 0x611   : > { %1238 = vmatpush.bf16.msra.mxu1 %v1820_v25 }
 0x613   : > { %1226 = vmatmul.bf16.vlgmr.msra.gmra.mxu0 %v1115_v28  ;;  %1384 = vmatpush.bf16.msra.mxu2 %v1995_v30 }
 0x614   : > { %1239 = vmatmul.bf16.vlgmr.msra.gmra.mxu1 %v1115_v28  ;;  %1397 = vmatpush.bf16.msra.mxu3 %v2003_v32 }
 0x690   : > { %v1227_v36 = vpop.f32.mrf.mxu0 }
 0x691   : > { %v1228_v37 = vadd.f32 %v1227_v36, %v1134_v34  ;;  %v1240_v38 = vpop.f32.mrf.mxu1 }
 0x692   : > { %v1241_v39 = vadd.f32 %v1240_v38, %v1135_v35 }
 0x693   : > { %v1244_v40 = vmax.f32 %v1228_v37, 0.0 }
 0x694   : > { %v1245_v41 = vmax.f32 %v1241_v39, 0.0 }
 0x695   : > { %v1247_v42 = vpack.c.bf16 %v1244_v40, %v1244_v40 }
 0x696   : > { %v1248_v43 = vpack.c.bf16 %v1245_v41, %v1245_v41 }
 0x697   : > { %1385 = vmatmul.bf16.vlgmr.msra.gmra.mxu2 %v1247_v42 }
 0x698   : > { %1398 = vmatmul.bf16.vlgmr.msra.gmra.mxu3 %v1248_v43  ;;  %v1229_v44 = vpop.f32.mrf.mxu0 }
 0x699   : > { %v1242_v45 = vpop.f32.mrf.mxu1 }
 0x71a   : > { %v1386_v46 = vpop.f32.mrf.mxu2 }
 0x71b   : > { %v1399_v48 = vpop.f32.mrf.mxu3 }
 0x71c   : > { %v1400_v49 = vadd.f32 %v1399_v48, %v1386_v46 }
 0x71e   : > { %v1403_v50 = vadd.f32 %v1400_v49, %v1246_v47 }
 0x71f   : > { %1408 = sbr.rel (%p1941_p12) target bundleno = 2103 (0x837), region = 72 }
 0x720   : > { %1404 = vst [vmem:[#allocation3] sm:$0xff] %v1403_v50 }
 0x722   : > { %v1388_v51 = vpop.f32.mrf.mxu2 }
 0x723   : > { %v1401_v52 = vpop.f32.mrf.mxu3 }
 0x724   : > { %v1411_v54 = vperm.slane %v2783_v1, 5  ;;  %v1409_v55 = vld [vmem:[#allocation2] sm:$0xff]  ;;  %v2473_v58 = vmov 128.0   ;;  %v1441_v16 = vperm.slane %v2783_v1, 3  ;;  %v1443_v17 = vperm.slane %v2783_v1, 4 }
 0x725   : > { %2199 = vrcp.f32 %v2473_v58 }
 0x727   : > { %v1410_v53 = vld [vmem:[#allocation3] sm:$0xff] }
 0x728   : > { %v1412_v56 = vadd.f32 %v1411_v54, %v1410_v53 }
 0x72a   : > { %v1413_v57 = vadd.f32 %v1412_v56, %v1409_v55 }
 0x72b   : > { %v2200_v59 = vpop.eup %2199 }
 0x72c   : > { %1414 = vadd.xlane.f32.xlu0 %v1413_v57  ;;  %v1417_v60 = vmul.f32 128.0, %v2200_v59  ;;  %vm1421_vm7 = vweird.f32 %v2200_v59 }
 0x72e   : > { %v1418_v61 = vsub.f32 1.0, %v1417_v60 }
 0x730   : > { %v1419_v62 = vmul.f32 %v2200_v59, %v1418_v61 }
 0x732   : > { %v1420_v63 = vadd.f32 %v2200_v59, %v1419_v62 }
 0x734   : > { %v1422_v2 = vsel %vm1421_vm7, %v2200_v59, %v1420_v63 }
 0x79f   : > { %v1415_v3 = vpop.xlane.xlu0 %1414 }
 0x7a0   : > { %v1423_v4 = vmul.f32 %v1422_v2, %v1415_v3 }
 0x7a2   : > { %v1424_v5 = vsub.f32 %v1413_v57, %v1423_v4 }
 0x7a4   : > { %v1425_v7 = vmul.f32 %v1424_v5, %v1424_v5 }
 0x7a6   : > { %1426 = vadd.xlane.f32.xlu0 %v1425_v7 }
 0x819   : > { %v1427_v8 = vpop.xlane.xlu0 %1426 }
 0x81a   : > { %v1428_v9 = vmul.f32 %v1427_v8, %v1422_v2 }
 0x81c   : > { %v1429_v10 = vadd.f32 1e-05, %v1428_v9 }
 0x81e   : > { %2201 = vrsqrt.f32 %v1429_v10  ;;  %vm1436_vm9 = vweird.f32 %v1429_v10 }
 0x824   : > { %v2202_v6 = vpop.eup %2201 }
 0x825   : > { %v1431_v11 = vmul.f32 %v2202_v6, %v1429_v10  ;;  %vm1437_vm8 = vweird.f32 %v2202_v6 }
 0x826   : > { %vm1438_vm10 = vmor %vm1436_vm9, %vm1437_vm8 }
 0x827   : > { %v1432_v12 = vmul.f32 %v2202_v6, %v1431_v11 }
 0x829   : > { %v1433_v13 = vmul.f32 0.5, %v1432_v12 }
 0x82b   : > { %v1434_v14 = vsub.f32 1.5, %v1433_v13 }
 0x82d   : > { %v1435_v15 = vmul.f32 %v2202_v6, %v1434_v14 }
 0x82f   : > { %v1439_v0 = vsel %vm1438_vm10, %v2202_v6, %v1435_v15 }
 0x830   : > { %v1440_v18 = vmul.f32 %v1439_v0, %v1424_v5 }
 0x832   : > { %v1442_v19 = vmul.f32 %v1441_v16, %v1440_v18 }
 0x834   : > { %v1444_v20 = vadd.f32 %v1443_v17, %v1442_v19 }
 0x836   : > { %1445 = vst [vmem:[%s2780_s19] sm:$0xff] %v1444_v20 }
 0x837 PF: > { %s3103_s10 = sld [smem:[#allocation21_spill]]  ;;  %s1459_s15 = sshll.u32 %s2780_s19, 4  ;;  %s1460_s15 = int_to_ptr.vmem [resolvable:$true] %s1459_s15 }
 0x838   : > { %s3104_s18 = sld [smem:[#allocation15_spill]] }
 0x839   : > { %s3106_s25 = sld [smem:[#allocation37_spill]] }
 0x83d   : > { %s1943_s5 = sshll.u32 %s3103_s10, 3 }
 0x83e   : > { %s3108_s12 = sand.u32 1, %s3104_s18  }
 0x83f   : > { %s3107_s20 = smov %s3106_s25  ;;  %s1457_s29 = scalar_lea.hbm %s3106_s25, %s1943_s5 }
 0x840   : > { %s1461_s11 = sshll.u32 %s1457_s29, 4  ;;  %s1447_s21 = scalar_lea.sflag [#allocation6], %s3108_s12  ;;  %s1462_s11 = int_to_ptr.hbm [resolvable:$true] %s1461_s11 }
 0x841   : > { %s2307_s3 = sshra.s32 %s1462_s11, 4  ;;  %s2313_s24 = scalar_lea.hbm %s3107_s20, 16  ;;  %s2308_s3 = int_to_ptr.hbm [resolvable:$true] %s2307_s3 }
 0x842   : > { %s2309_s17 = scalar_lea.hbm %s2308_s3, 8  ;;  %p2314_p5 = scmp.lt.s32.totalorder %s2308_s3, %s3107_s20 }
 0x843   : > { %p2310_p0 = scmp.ne.s32.totalorder %s2308_s3, %s2309_s17  ;;  %p2315_p10 = scmp.lt.s32.totalorder %s2313_s24, %s2309_s17 }
 0x845   : > { %p2311_p2 = pnand %p2310_p0, %p2707_p6  ;;  %p2316_p13 = por %p2315_p10, %p2314_p5 }
 0x847   : > { %p2312_p4 = pneg %p2311_p2 }
 0x849   : > { %p2317_p3 = pnand %p2316_p13, %p2312_p4 }
 0x84b   : > { %2320 = shalt.err (!%p2317_p3)
}
 0x84c   : > { %2020 = dma.vmem_to_hbm [thread:$0]  (%p2707_p6), %s1460_s15, 128, %s1462_s11, %s1447_s21  }
 0x84d PF: > { %s3109_s19 = sld [smem:[#allocation23_spill]] }
 0x84e   : > { %s3110_s16 = sld [smem:[#allocation14_spill]] }
 0x853   : > { %p2037_p7 = scmp.ge.s32.totalorder %s3109_s19, 2 }
 0x854   : > { %s1473_s7 = sand.u32 1, %s3110_s16  }
 0x855   : > { %p2033_p8 = pnand %p2037_p7, %p2712_p9  ;;  %s1474_s2 = scalar_lea.sflag [#allocation6], %s1473_s7 }
 0x857   : > { %p2034_p11 = pneg %p2033_p8 }
 0x859   : > { %2394 = dma.done.wait (%p2034_p11), %s1474_s2, 128  }
 0x85a   : > { %2396 = vsyncadd (%p2034_p11), %s1474_s2, 4294967168  ;;  %s26_s16 = sadd.s32 1, %s3109_s19   ;;  %s3113_s24 = sld [smem:[#allocation15_spill]] }
 0x85b   : > { %p2973_p1 = scmp.ge.s32.totalorder %s26_s16, 10   ;;  %s3114_s25 = sld [smem:[#allocation16_spill]] }
 0x85c   : > { %s3115_s26 = sld [smem:[#allocation29_spill]]  ;;  %s3125_s27 = smov %s2415_s28 }
 0x85d   : > { %s3116_s18 = sld [smem:[#allocation17_spill]]  ;;  %s3127_s30 = smov %s2427_s8 }
 0x85e   : > { %s3117_s29 = sld [smem:[#allocation27_spill]]  ;;  %s3129_s10 = smov %s2447_s13 }
 0x85f   : > { %s3118_s6 = sld [smem:[#allocation18_spill]]  ;;  %s3130_s11 = smov %s2451_s14 }
 0x860   : > { %s3119_s9 = sld [smem:[#allocation28_spill]] }
 0x861   : > { %s3120_s12 = sld [smem:[#allocation22_spill]] }
 0x862   : > { %s3121_s5 = sld [smem:[#allocation24_spill]] }
 0x863   : > { %s3122_s0 = sld [smem:[#allocation25_spill]]  ;;  %s3126_s28 = smov %s3116_s18 }
 0x864   : > { %s3123_s15 = sld [smem:[#allocation26_spill]] }
 0x865   : > { %s3128_s8 = smov %s3118_s6  ;;  %25 = sbr.rel (!%p2973_p1) target bundleno = 20 (0x14), region = 141 }
 0x868   : > { %s3131_s13 = smov %s3121_s5 }
 0x869   : > { %s3132_s14 = smov %s3122_s0 }
 0x86a   :  { %1480 = vsyncpa [#allocation5], 1 }
 0x86b   :  { %1482 = vsyncpa [#allocation5 + $0x1], 1 }
 0x86c   :  { %1483 = vsyncpa [#allocation8], 1 }
 0x86d   :  { %1485 = vsyncpa [#allocation8 + $0x1], 1 }
 0x86e   :  { %1486 = vsyncpa [#allocation6], 1 }
 0x86f   :  { %1488 = vsyncpa [#allocation6 + $0x1], 1 }

</bundles_post_ra>
